<compile_context>
chip_gen: v6e
topology: v6e:2x2x1
jax: 0.10.0
libtpu: 0.0.40
codegen_flags: <defaults>
</compile_context>

<pallas_src>
import functools
import math

import jax
import jax.numpy as jnp
from jax.experimental import pallas as pl
from jax.experimental.pallas import tpu as pltpu


KW = 4
PADW = int(math.ceil((KW - 1.0) / 2))   # = 2, same as the PyTorch module
LRELU_SLOPE = 0.2
BN_EPS = 1e-5


def _round_up(x, m):
    return ((x + m - 1) // m) * m


def _pick_tile(total, cap, mult):
    """Largest multiple-of-`mult` divisor of `total` that is <= cap."""
    best = mult
    t = mult
    lim = min(cap, total)
    while t <= lim:
        if total % t == 0:
            best = t
        t += mult
    return best


@functools.lru_cache(maxsize=None)
def _hw_config():
    """Generation-aware tile caps and scoped-VMEM limit."""
    vmem = None
    try:
        vmem = pltpu.get_tpu_info().vmem_capacity_bytes
    except Exception:            # not running on a TPU (e.g. interpret mode)
        vmem = None
    if vmem is not None and vmem >= 100 * 1024 * 1024:
        # v5e / v6e: 128 MiB VMEM -> big tiles, raised scoped limit.
        return {"tm_cap": 512, "tk_cap": 2048, "vmem_limit": 96 * 1024 * 1024}
    # v7x (64 MiB per TensorCore) or unknown backend: conservative tiles.
    return {"tm_cap": 256, "tk_cap": 1024, "vmem_limit": 40 * 1024 * 1024}


def _gemm_out_width(cout):
    """GEMM N width: keep small widths un-padded (block == full dim is legal);
    only force 128-alignment when N is large enough to need tiling."""
    if cout <= 512 or cout % 128 == 0:
        return cout
    return _round_up(cout, 128)


# ---------------------------------------------------------------------------
# Pallas kernels
# ---------------------------------------------------------------------------

def _gemm_kernel(a_ref, b_ref, bias_ref, *refs, act, slope, with_stats):
    """One (tm, tn) tile of A @ B + bias with optional fused LeakyReLU and
    optional per-channel sum / sum-of-squares side outputs (taken on the
    PRE-BIAS accumulator, for fused BatchNorm statistics).

    Grid = (M tiles, N tiles, K tiles), reduction innermost; acc_ref is an f32
    VMEM accumulator living across the K steps.
    NOTE: pl.program_id / pl.num_programs are only called at the top level of
    the kernel (never inside pl.when bodies) so the kernel also lowers under
    the CPU interpreter.
    """
    if with_stats:
        o_ref, sum_ref, sq_ref, acc_ref = refs
    else:
        o_ref, acc_ref = refs

    k = pl.program_id(2)
    k_last = pl.num_programs(2) - 1

    @pl.when(k == 0)
    def _init():
        acc_ref[...] = jnp.zeros_like(acc_ref)

    acc_ref[...] += jnp.dot(a_ref[...], b_ref[...],
                            preferred_element_type=jnp.float32)

    @pl.when(k == k_last)
    def _epilogue():
        acc = acc_ref[...]
        if with_stats:
            # Zero-padded rows of A contribute exactly 0 to the pre-bias sums,
            # so no row mask (and no program_id) is needed here.  The conv
            # bias (zero for BN layers anyway) is folded into the mean in XLA;
            # variance is shift-invariant.
            sum_ref[...] = jnp.sum(acc, axis=0, keepdims=True)[None]
            sq_ref[...] = jnp.sum(acc * acc, axis=0, keepdims=True)[None]
        out = acc + bias_ref[...]
        if act:
            out = jnp.where(out >= 0, out, slope * out)
        o_ref[...] = out.astype(o_ref.dtype)


def _scale_shift_act_kernel(x_ref, scale_ref, shift_ref, o_ref, *, slope):
    """y = x * scale + shift, then LeakyReLU.  Pure vld/vst pass."""
    y = x_ref[...].astype(jnp.float32) * scale_ref[...] + shift_ref[...]
    o_ref[...] = jnp.where(y >= 0, y, slope * y).astype(o_ref.dtype)


# ---------------------------------------------------------------------------
# Pallas wrappers
# ---------------------------------------------------------------------------

def gemm_bias_act(patches, w, bias, *, act, with_stats, out_dtype,
                  slope=LRELU_SLOPE):
    """patches: (M, K) bf16; w: (K, Np) bf16; bias: (1, Np) f32.
    Returns (out (Mp, Np), sums (1, Np) | None, sqs (1, Np) | None)."""
    M, K = patches.shape
    Kw, Np = w.shape
    assert Kw == K, (Kw, K)
    hw = _hw_config()

    # Align M only to the 8-row sublane granule (<= 7 zero rows); every tile
    # below is a divisor of Mp so no further full-matrix padding is needed.
    Mp = _round_up(M, 8)
    if Mp != M:
        patches = jnp.pad(patches, ((0, Mp - M), (0, 0)))

    tm = _pick_tile(Mp, hw["tm_cap"], 8)
    # Keep gn == 1 whenever the output width is modest so the (much larger)
    # A operand streams from HBM exactly once.
    if Np <= 512:
        tn = Np
    elif Np % 256 == 0:
        tn = _pick_tile(Np, 512, 256)
    else:
        tn = _pick_tile(Np, 512, 128)
    if Np % tn:
        tn = Np
    if K % 256 == 0:              # 256-aligned contraction for the 2x256 MXU
        tk = _pick_tile(K, hw["tk_cap"], 256)
    elif K % 128 == 0:
        tk = _pick_tile(K, hw["tk_cap"], 128)
    else:
        tk = K                    # small first-layer K (64 * input_nc)
    # v7x has two TensorCores: keep at least one "parallel" axis with extent 2.
    if Mp // tm == 1 and Np // tn == 1 and Mp >= 16:
        tm = _pick_tile(Mp, max(8, Mp // 2), 8)

    gm, gn, gk = Mp // tm, Np // tn, K // tk

    out_shapes = [jax.ShapeDtypeStruct((Mp, Np), out_dtype)]
    out_specs = [pl.BlockSpec((tm, tn), lambda i, j, k: (i, j))]
    if with_stats:
        out_shapes += [jax.ShapeDtypeStruct((gm, 1, Np), jnp.float32)] * 2
        out_specs += [pl.BlockSpec((1, 1, tn), lambda i, j, k: (i, 0, j))] * 2

    results = pl.pallas_call(
        functools.partial(_gemm_kernel, act=act, slope=slope,
                          with_stats=with_stats),
        out_shape=tuple(out_shapes),
        grid=(gm, gn, gk),
        in_specs=[
            pl.BlockSpec((tm, tk), lambda i, j, k: (i, k)),
            pl.BlockSpec((tk, tn), lambda i, j, k: (k, j)),
            pl.BlockSpec((1, tn), lambda i, j, k: (0, j)),
        ],
        out_specs=tuple(out_specs),
        scratch_shapes=[pltpu.VMEM((tm, tn), jnp.float32)],
        compiler_params=pltpu.CompilerParams(
            dimension_semantics=("parallel", "parallel", "arbitrary"),
            vmem_limit_bytes=hw["vmem_limit"]),
    )(patches, w, bias)

    if with_stats:
        out, psum, psq = results
        return out, psum.sum(axis=0), psq.sum(axis=0)
    return results[0], None, None


def batchnorm_leakyrelu(x, sums, sqs, m_true, conv_bias, gamma, beta, *,
                        out_dtype=jnp.bfloat16, eps=BN_EPS, slope=LRELU_SLOPE):
    """Training-mode BatchNorm3d (batch stats over the m_true valid rows,
    biased variance) fused with LeakyReLU.  Per-channel scale/shift are
    precomputed in XLA (tiny (1, Np) math), so the Pallas pass streams x once
    in bf16 with only two broadcast operands."""
    Mp, Np = x.shape
    hw = _hw_config()
    count = jnp.float32(m_true)
    mean_acc = sums / count
    mean = mean_acc + conv_bias            # statistics were taken pre-bias
    # TODO(synk): switch to shifted/Welford sums if E[x^2]-E[x]^2 cancellation
    # ever matters; f32 is adequate for discriminator activations.
    var = jnp.maximum(sqs / count - mean_acc * mean_acc, 0.0)
    scale = gamma * jax.lax.rsqrt(var + eps)
    shift = beta - mean * scale

    # Large, memory-bound tiles; split in two when possible for v7x megacore.
    row_cap = max(8, min(Mp, (2 * 1024 * 1024) // max(Np, 1)))
    tm = _pick_tile(Mp, row_cap, 8)
    if Mp // tm == 1 and Mp >= 16:
        tm = _pick_tile(Mp, max(8, Mp // 2), 8)

    return pl.pallas_call(
        functools.partial(_scale_shift_act_kernel, slope=slope),
        out_shape=jax.ShapeDtypeStruct((Mp, Np), out_dtype),
        grid=(Mp // tm,),
        in_specs=[
            pl.BlockSpec((tm, Np), lambda i: (i, 0)),
            pl.BlockSpec((1, Np), lambda i: (0, 0)),
            pl.BlockSpec((1, Np), lambda i: (0, 0)),
        ],
        out_specs=pl.BlockSpec((tm, Np), lambda i: (i, 0)),
        compiler_params=pltpu.CompilerParams(
            dimension_semantics=("parallel",),
            vmem_limit_bytes=hw["vmem_limit"]),
    )(x, scale, shift)


# ---------------------------------------------------------------------------
# Conv3d lowering glue and model assembly
# ---------------------------------------------------------------------------

def im2col3d(x, stride):
    """x: (N, D, H, W, C) bf16 channels-last -> (M, 64*C) patches + out shape.
    TODO(synk): fuse this gather into the GEMM via in-kernel strided DMA so the
    inflated patch matrix never hits HBM."""
    N, D, H, W, C = x.shape
    xp = jnp.pad(x, ((0, 0), (PADW, PADW), (PADW, PADW), (PADW, PADW), (0, 0)))
    Do = (D + 2 * PADW - KW) // stride + 1
    Ho = (H + 2 * PADW - KW) // stride + 1
    Wo = (W + 2 * PADW - KW) // stride + 1
    cols = []
    for kd in range(KW):
        for kh in range(KW):
            for kx in range(KW):
                cols.append(xp[:,
                               kd:kd + stride * Do:stride,
                               kh:kh + stride * Ho:stride,
                               kx:kx + stride * Wo:stride, :])
    patches = jnp.concatenate(cols, axis=-1)       # (N, Do, Ho, Wo, 64*C)
    return patches.reshape(N * Do * Ho * Wo, KW * KW * KW * C), (N, Do, Ho, Wo)


def build_layer_configs(input_nc, ndf, n_layers, n_out_channels):
    # (in_c, out_c, stride, has_conv_bias, has_bn, has_act)
    cfgs = [(input_nc, ndf, 2, True, False, True)]
    nf_mult = 1
    for n in range(1, n_layers):
        nf_prev, nf_mult = nf_mult, min(2 ** n, 8)
        cfgs.append((ndf * nf_prev, ndf * nf_mult, 2, False, True, True))
    nf_prev, nf_mult = nf_mult, min(2 ** n_layers, 8)
    cfgs.append((ndf * nf_prev, ndf * nf_mult, 1, False, True, True))
    cfgs.append((ndf * nf_mult, n_out_channels, 1, True, False, False))
    return cfgs


def init_params(key, cfgs):
    params = []
    for (cin, cout, _stride, has_bias, has_bn, _act) in cfgs:
        key, kw_, kb_ = jax.random.split(key, 3)
        w = 0.02 * jax.random.normal(kw_, (cout, cin, KW, KW, KW), jnp.float32)
        b = (0.02 * jax.random.normal(kb_, (cout,), jnp.float32)
             if has_bias else jnp.zeros((cout,), jnp.float32))
        gamma = jnp.ones((cout,), jnp.float32) if has_bn else None
        beta = jnp.zeros((cout,), jnp.float32) if has_bn else None
        params.append(dict(w=w, b=b, gamma=gamma, beta=beta))
    return params


def prepare_params(params):
    """One-time prep: PyTorch Conv3d weight (O, C, kd, kh, kw) -> bf16 GEMM
    weight (K, Np) in im2col (kd, kh, kw, C) ordering; f32 (1, Np) bias and BN
    gamma/beta.  Small output widths stay un-padded (no 16x zero channels)."""
    prepared = []
    for p in params:
        O, C, kd, kh, kw = p["w"].shape
        K = kd * kh * kw * C
        Np = _gemm_out_width(O)
        w = jnp.transpose(p["w"], (2, 3, 4, 1, 0)).reshape(K, O)
        w = w.astype(jnp.bfloat16)
        if Np != O:
            w = jnp.pad(w, ((0, 0), (0, Np - O)))
        bias = jnp.zeros((1, Np), jnp.float32).at[0, :O].set(p["b"])
        if p["gamma"] is not None:
            gamma = jnp.zeros((1, Np), jnp.float32).at[0, :O].set(p["gamma"])
            beta = jnp.zeros((1, Np), jnp.float32).at[0, :O].set(p["beta"])
        else:
            gamma = beta = None
        prepared.append(dict(w=w, b=bias, gamma=gamma, beta=beta))
    return prepared


def nlayer_3d_discriminator_forward(x_ncdhw, prepared, cfgs):
    """x_ncdhw: (N, C, D, H, W) f32.  Returns [output] like the PyTorch module
    (getIntermFeat=False, use_sigmoid=False, BatchNorm in training mode)."""
    x = jnp.transpose(x_ncdhw, (0, 2, 3, 4, 1)).astype(jnp.bfloat16)
    n_total = len(cfgs)
    for li, (p, cfg) in enumerate(zip(prepared, cfgs)):
        _cin, cout, stride, _has_bias, has_bn, has_act = cfg
        patches, (N, Do, Ho, Wo) = im2col3d(x, stride)
        M = patches.shape[0]
        is_last = li == n_total - 1
        fuse_act = has_act and not has_bn   # LeakyReLU after BN lives in BN pass
        out_dtype = jnp.float32 if is_last else jnp.bfloat16
        out, sums, sqs = gemm_bias_act(
            patches, p["w"], p["b"], act=fuse_act, with_stats=has_bn,
            out_dtype=out_dtype)
        if has_bn:
            out = batchnorm_leakyrelu(out, sums, sqs, M, p["b"], p["gamma"],
                                      p["beta"], out_dtype=jnp.bfloat16)
        if out.shape[0] != M:
            out = out[:M]
        if out.shape[1] != cout:
            out = out[:, :cout]
        x = out.reshape(N, Do, Ho, Wo, cout)
    y = jnp.transpose(x.astype(jnp.float32), (0, 4, 1, 2, 3))   # back to NCDHW
    return [y]


# ---------------------------------------------------------------------------
# main
# ---------------------------------------------------------------------------

if __name__ == "__main__":
    # Small, deterministic shapes: batch=1, input_nc=2, ndf=8, n_layers=3, 8^3.
    input_nc, ndf, n_layers, n_out_channels = 2, 8, 3, 1
    batch, D = 1, 8

    key = jax.random.PRNGKey(0)
    kx, kp = jax.random.split(key)
    x = jax.random.normal(kx, (batch, input_nc, D, D, D), jnp.float32)

    cfgs = build_layer_configs(input_nc, ndf, n_layers, n_out_channels)
    params = init_params(kp, cfgs)
    prepared = prepare_params(params)        # one-time weight prep

    fwd = jax.jit(functools.partial(nlayer_3d_discriminator_forward, cfgs=cfgs))
    out = jax.block_until_ready(fwd(x, prepared)[0])

    # Spatial trace for D=8: 8 -> 5 -> 3 -> 2 -> 3 -> 4.
    assert out.shape == (batch, n_out_channels, 4, 4, 4), out.shape
    assert bool(jnp.all(jnp.isfinite(out)))
    print("KERNEL_OK")
</pallas_src>

<mosaic_0001>
module attributes {stable_mosaic.version = 11 : i64} {
  func.func @_gemm_kernel(%arg0: i32, %arg1: i32, %arg2: i32, %arg3: memref<64x128xbf16, #tpu.memory_space<vmem>>, %arg4: memref<128x8xbf16, #tpu.memory_space<vmem>>, %arg5: memref<1x8xf32, #tpu.memory_space<vmem>>, %arg6: memref<64x8xbf16, #tpu.memory_space<vmem>>, %arg7: memref<64x8xf32, #tpu.memory_space<vmem>>) attributes {dimension_semantics = [#tpu.dimension_semantics<parallel>, #tpu.dimension_semantics<parallel>, #tpu.dimension_semantics<arbitrary>], iteration_bounds = array<i64: 2, 1, 1>, scalar_prefetch = 0 : i64, scratch_operands = 1 : i64, tpu.core_type = #tpu.core_type<tc>, window_params = [{transform_indices = @transform_0, window_bounds = array<i64: 64, 128>}, {transform_indices = @transform_1, window_bounds = array<i64: 128, 8>}, {transform_indices = @transform_2, window_bounds = array<i64: 1, 8>}, {transform_indices = @transform_3, window_bounds = array<i64: 64, 8>}]} {
    %c0_i32 = arith.constant 0 : i32
    %0 = arith.cmpi eq, %arg2, %c0_i32 : i32
    %1 = arith.extui %0 : i1 to i32
    %c0_i32_0 = arith.constant 0 : i32
    %2 = arith.cmpi ne, %1, %c0_i32_0 : i32
    scf.if %2 {
      %cst_10 = arith.constant 0.000000e+00 : f32
      %12 = vector.broadcast %cst_10 : f32 to vector<64x8xf32>
      %c0_11 = arith.constant 0 : index
      %c0_12 = arith.constant 0 : index
      %13 = vector.load %arg7[%c0_11, %c0_12] : memref<64x8xf32, #tpu.memory_space<vmem>>, vector<64x8xf32>
      tpu.vector_store %arg7[%c0_11, %c0_12], %12 {strides = array<i32>} : memref<64x8xf32, #tpu.memory_space<vmem>>, vector<64x8xf32>,
    } else {
    }
    %c0 = arith.constant 0 : index
    %c0_1 = arith.constant 0 : index
    %3 = vector.load %arg7[%c0, %c0_1] : memref<64x8xf32, #tpu.memory_space<vmem>>, vector<64x8xf32>
    %c0_2 = arith.constant 0 : index
    %c0_3 = arith.constant 0 : index
    %4 = vector.load %arg3[%c0_2, %c0_3] : memref<64x128xbf16, #tpu.memory_space<vmem>>, vector<64x128xbf16>
    %c0_4 = arith.constant 0 : index
    %c0_5 = arith.constant 0 : index
    %5 = vector.load %arg4[%c0_4, %c0_5] : memref<128x8xbf16, #tpu.memory_space<vmem>>, vector<128x8xbf16>
    %cst = arith.constant dense<0.000000e+00> : vector<64x8xf32>
    %6 = tpu.matmul %4, %5, %cst {dimension_numbers = #tpu.dot_dimension_numbers<[1], [0], [0], [1], [0, 0, 1, 1], [], []>} : vector<64x128xbf16>, vector<128x8xbf16>, vector<64x8xf32> -> vector<64x8xf32>
    %7 = arith.addf %3, %6 : vector<64x8xf32>
    %c0_6 = arith.constant 0 : index
    %c0_7 = arith.constant 0 : index
    %8 = vector.load %arg7[%c0_6, %c0_7] : memref<64x8xf32, #tpu.memory_space<vmem>>, vector<64x8xf32>
    tpu.vector_store %arg7[%c0_6, %c0_7], %7 {strides = array<i32>} : memref<64x8xf32, #tpu.memory_space<vmem>>, vector<64x8xf32>,
    %c0_i32_8 = arith.constant 0 : i32
    %9 = arith.cmpi eq, %arg2, %c0_i32_8 : i32
    %10 = arith.extui %9 : i1 to i32
    %c0_i32_9 = arith.constant 0 : i32
    %11 = arith.cmpi ne, %10, %c0_i32_9 : i32
    scf.if %11 {
      %c0_10 = arith.constant 0 : index
      %c0_11 = arith.constant 0 : index
      %12 = vector.load %arg7[%c0_10, %c0_11] : memref<64x8xf32, #tpu.memory_space<vmem>>, vector<64x8xf32>
      %c0_12 = arith.constant 0 : index
      %c0_13 = arith.constant 0 : index
      %13 = vector.load %arg5[%c0_12, %c0_13] : memref<1x8xf32, #tpu.memory_space<vmem>>, vector<1x8xf32>
      %14 = vector.broadcast %13 : vector<1x8xf32> to vector<64x8xf32>
      %15 = arith.addf %12, %14 : vector<64x8xf32>
      %cst_14 = arith.constant 0.000000e+00 : f32
      %16 = vector.broadcast %cst_14 : f32 to vector<64x8xf32>
      %17 = arith.cmpf oge, %15, %16 : vector<64x8xf32>
      %cst_15 = arith.constant 2.000000e-01 : f32
      %18 = vector.broadcast %cst_15 : f32 to vector<64x8xf32>
      %19 = arith.mulf %18, %15 : vector<64x8xf32>
      %20 = arith.select %17, %15, %19 : vector<64x8xi1>, vector<64x8xf32>
      %21 = arith.truncf %20 : vector<64x8xf32> to vector<64x8xbf16>
      %c0_16 = arith.constant 0 : index
      %c0_17 = arith.constant 0 : index
      %22 = vector.load %arg6[%c0_16, %c0_17] : memref<64x8xbf16, #tpu.memory_space<vmem>>, vector<64x8xbf16>
      tpu.vector_store %arg6[%c0_16, %c0_17], %21 {strides = array<i32>} : memref<64x8xbf16, #tpu.memory_space<vmem>>, vector<64x8xbf16>,
    } else {
    }
    return
  }
  func.func @transform_0(%arg0: i32, %arg1: i32, %arg2: i32) -> (i32, i32) {
    %c0_i32 = arith.constant 0 : i32
    return %arg0, %arg2 : i32, i32
  }
  func.func @transform_1(%arg0: i32, %arg1: i32, %arg2: i32) -> (i32, i32) {
    %c0_i32 = arith.constant 0 : i32
    return %arg2, %arg1 : i32, i32
  }
  func.func @transform_2(%arg0: i32, %arg1: i32, %arg2: i32) -> (i32, i32) {
    %c0_i32 = arith.constant 0 : i32
    %c0_i32_0 = arith.constant 0 : i32
    return %c0_i32, %arg1 : i32, i32
  }
  func.func @transform_3(%arg0: i32, %arg1: i32, %arg2: i32) -> (i32, i32) {
    %c0_i32 = arith.constant 0 : i32
    return %arg0, %arg1 : i32, i32
  }
}

module attributes {stable_mosaic.version = 11 : i64} {
  func.func @_gemm_kernel(%arg0: i32, %arg1: i32, %arg2: i32, %arg3: memref<16x512xbf16, #tpu.memory_space<vmem>>, %arg4: memref<512x16xbf16, #tpu.memory_space<vmem>>, %arg5: memref<1x16xf32, #tpu.memory_space<vmem>>, %arg6: memref<16x16xbf16, #tpu.memory_space<vmem>>, %arg7: memref<1x1x16xf32, #tpu.memory_space<vmem>>, %arg8: memref<1x1x16xf32, #tpu.memory_space<vmem>>, %arg9: memref<16x16xf32, #tpu.memory_space<vmem>>) attributes {dimension_semantics = [#tpu.dimension_semantics<parallel>, #tpu.dimension_semantics<parallel>, #tpu.dimension_semantics<arbitrary>], iteration_bounds = array<i64: 2, 1, 1>, scalar_prefetch = 0 : i64, scratch_operands = 1 : i64, tpu.core_type = #tpu.core_type<tc>, window_params = [{transform_indices = @transform_0, window_bounds = array<i64: 16, 512>}, {transform_indices = @transform_1, window_bounds = array<i64: 512, 16>}, {transform_indices = @transform_2, window_bounds = array<i64: 1, 16>}, {transform_indices = @transform_3, window_bounds = array<i64: 16, 16>}, {transform_indices = @transform_4, window_bounds = array<i64: 1, 1, 16>}, {transform_indices = @transform_5, window_bounds = array<i64: 1, 1, 16>}]} {
    %c0_i32 = arith.constant 0 : i32
    %0 = arith.cmpi eq, %arg2, %c0_i32 : i32
    %1 = arith.extui %0 : i1 to i32
    %c0_i32_0 = arith.constant 0 : i32
    %2 = arith.cmpi ne, %1, %c0_i32_0 : i32
    scf.if %2 {
      %cst_10 = arith.constant 0.000000e+00 : f32
      %12 = vector.broadcast %cst_10 : f32 to vector<16x16xf32>
      %c0_11 = arith.constant 0 : index
      %c0_12 = arith.constant 0 : index
      %13 = vector.load %arg9[%c0_11, %c0_12] : memref<16x16xf32, #tpu.memory_space<vmem>>, vector<16x16xf32>
      tpu.vector_store %arg9[%c0_11, %c0_12], %12 {strides = array<i32>} : memref<16x16xf32, #tpu.memory_space<vmem>>, vector<16x16xf32>,
    } else {
    }
    %c0 = arith.constant 0 : index
    %c0_1 = arith.constant 0 : index
    %3 = vector.load %arg9[%c0, %c0_1] : memref<16x16xf32, #tpu.memory_space<vmem>>, vector<16x16xf32>
    %c0_2 = arith.constant 0 : index
    %c0_3 = arith.constant 0 : index
    %4 = vector.load %arg3[%c0_2, %c0_3] : memref<16x512xbf16, #tpu.memory_space<vmem>>, vector<16x512xbf16>
    %c0_4 = arith.constant 0 : index
    %c0_5 = arith.constant 0 : index
    %5 = vector.load %arg4[%c0_4, %c0_5] : memref<512x16xbf16, #tpu.memory_space<vmem>>, vector<512x16xbf16>
    %cst = arith.constant dense<0.000000e+00> : vector<16x16xf32>
    %6 = tpu.matmul %4, %5, %cst {dimension_numbers = #tpu.dot_dimension_numbers<[1], [0], [0], [1], [0, 0, 1, 1], [], []>} : vector<16x512xbf16>, vector<512x16xbf16>, vector<16x16xf32> -> vector<16x16xf32>
    %7 = arith.addf %3, %6 : vector<16x16xf32>
    %c0_6 = arith.constant 0 : index
    %c0_7 = arith.constant 0 : index
    %8 = vector.load %arg9[%c0_6, %c0_7] : memref<16x16xf32, #tpu.memory_space<vmem>>, vector<16x16xf32>
    tpu.vector_store %arg9[%c0_6, %c0_7], %7 {strides = array<i32>} : memref<16x16xf32, #tpu.memory_space<vmem>>, vector<16x16xf32>,
    %c0_i32_8 = arith.constant 0 : i32
    %9 = arith.cmpi eq, %arg2, %c0_i32_8 : i32
    %10 = arith.extui %9 : i1 to i32
    %c0_i32_9 = arith.constant 0 : i32
    %11 = arith.cmpi ne, %10, %c0_i32_9 : i32
    scf.if %11 {
      %c0_10 = arith.constant 0 : index
      %c0_11 = arith.constant 0 : index
      %12 = vector.load %arg9[%c0_10, %c0_11] : memref<16x16xf32, #tpu.memory_space<vmem>>, vector<16x16xf32>
      %cst_12 = arith.constant dense<0.000000e+00> : vector<16xf32>
      %13 = vector.multi_reduction <add>, %12, %cst_12 [0] : vector<16x16xf32> to vector<16xf32>
      %14 = vector.shape_cast %13 : vector<16xf32> to vector<1x16xf32>
      %15 = vector.shape_cast %14 : vector<1x16xf32> to vector<1x1x16xf32>
      %c0_13 = arith.constant 0 : index
      %c0_14 = arith.constant 0 : index
      %c0_15 = arith.constant 0 : index
      %16 = vector.load %arg7[%c0_13, %c0_14, %c0_15] : memref<1x1x16xf32, #tpu.memory_space<vmem>>, vector<1x1x16xf32>
      tpu.vector_store %arg7[%c0_13, %c0_14, %c0_15], %15 {strides = array<i32>} : memref<1x1x16xf32, #tpu.memory_space<vmem>>, vector<1x1x16xf32>,
      %17 = arith.mulf %12, %12 : vector<16x16xf32>
      %cst_16 = arith.constant dense<0.000000e+00> : vector<16xf32>
      %18 = vector.multi_reduction <add>, %17, %cst_16 [0] : vector<16x16xf32> to vector<16xf32>
      %19 = vector.shape_cast %18 : vector<16xf32> to vector<1x16xf32>
      %20 = vector.shape_cast %19 : vector<1x16xf32> to vector<1x1x16xf32>
      %c0_17 = arith.constant 0 : index
      %c0_18 = arith.constant 0 : index
      %c0_19 = arith.constant 0 : index
      %21 = vector.load %arg8[%c0_17, %c0_18, %c0_19] : memref<1x1x16xf32, #tpu.memory_space<vmem>>, vector<1x1x16xf32>
      tpu.vector_store %arg8[%c0_17, %c0_18, %c0_19], %20 {strides = array<i32>} : memref<1x1x16xf32, #tpu.memory_space<vmem>>, vector<1x1x16xf32>,
      %c0_20 = arith.constant 0 : index
      %c0_21 = arith.constant 0 : index
      %22 = vector.load %arg5[%c0_20, %c0_21] : memref<1x16xf32, #tpu.memory_space<vmem>>, vector<1x16xf32>
      %23 = vector.broadcast %22 : vector<1x16xf32> to vector<16x16xf32>
      %24 = arith.addf %12, %23 : vector<16x16xf32>
      %25 = arith.truncf %24 : vector<16x16xf32> to vector<16x16xbf16>
      %c0_22 = arith.constant 0 : index
      %c0_23 = arith.constant 0 : index
      %26 = vector.load %arg6[%c0_22, %c0_23] : memref<16x16xbf16, #tpu.memory_space<vmem>>, vector<16x16xbf16>
      tpu.vector_store %arg6[%c0_22, %c0_23], %25 {strides = array<i32>} : memref<16x16xbf16, #tpu.memory_space<vmem>>, vector<16x16xbf16>,
    } else {
    }
    return
  }
  func.func @transform_0(%arg0: i32, %arg1: i32, %arg2: i32) -> (i32, i32) {
    %c0_i32 = arith.constant 0 : i32
    return %arg0, %arg2 : i32, i32
  }
  func.func @transform_1(%arg0: i32, %arg1: i32, %arg2: i32) -> (i32, i32) {
    %c0_i32 = arith.constant 0 : i32
    return %arg2, %arg1 : i32, i32
  }
  func.func @transform_2(%arg0: i32, %arg1: i32, %arg2: i32) -> (i32, i32) {
    %c0_i32 = arith.constant 0 : i32
    %c0_i32_0 = arith.constant 0 : i32
    return %c0_i32, %arg1 : i32, i32
  }
  func.func @transform_3(%arg0: i32, %arg1: i32, %arg2: i32) -> (i32, i32) {
    %c0_i32 = arith.constant 0 : i32
    return %arg0, %arg1 : i32, i32
  }
  func.func @transform_4(%arg0: i32, %arg1: i32, %arg2: i32) -> (i32, i32, i32) {
    %c0_i32 = arith.constant 0 : i32
    %c0_i32_0 = arith.constant 0 : i32
    return %arg0, %c0_i32, %arg1 : i32, i32, i32
  }
  func.func @transform_5(%arg0: i32, %arg1: i32, %arg2: i32) -> (i32, i32, i32) {
    %c0_i32 = arith.constant 0 : i32
    %c0_i32_0 = arith.constant 0 : i32
    return %arg0, %c0_i32, %arg1 : i32, i32, i32
  }
}

module attributes {stable_mosaic.version = 11 : i64} {
  func.func @_scale_shift_act_kernel(%arg0: i32, %arg1: memref<16x16xbf16, #tpu.memory_space<vmem>>, %arg2: memref<1x16xf32, #tpu.memory_space<vmem>>, %arg3: memref<1x16xf32, #tpu.memory_space<vmem>>, %arg4: memref<16x16xbf16, #tpu.memory_space<vmem>>) attributes {dimension_semantics = [#tpu.dimension_semantics<parallel>], iteration_bounds = array<i64: 2>, scalar_prefetch = 0 : i64, scratch_operands = 0 : i64, tpu.core_type = #tpu.core_type<tc>, window_params = [{transform_indices = @transform_0, window_bounds = array<i64: 16, 16>}, {pipeline_mode = #tpu.pipeline_mode<synchronous>, transform_indices = @transform_1, window_bounds = array<i64: 1, 16>}, {pipeline_mode = #tpu.pipeline_mode<synchronous>, transform_indices = @transform_2, window_bounds = array<i64: 1, 16>}, {transform_indices = @transform_3, window_bounds = array<i64: 16, 16>}]} {
    %c0 = arith.constant 0 : index
    %c0_0 = arith.constant 0 : index
    %0 = vector.load %arg1[%c0, %c0_0] : memref<16x16xbf16, #tpu.memory_space<vmem>>, vector<16x16xbf16>
    %1 = arith.extf %0 : vector<16x16xbf16> to vector<16x16xf32>
    %c0_1 = arith.constant 0 : index
    %c0_2 = arith.constant 0 : index
    %2 = vector.load %arg2[%c0_1, %c0_2] : memref<1x16xf32, #tpu.memory_space<vmem>>, vector<1x16xf32>
    %3 = vector.broadcast %2 : vector<1x16xf32> to vector<16x16xf32>
    %4 = arith.mulf %1, %3 : vector<16x16xf32>
    %c0_3 = arith.constant 0 : index
    %c0_4 = arith.constant 0 : index
    %5 = vector.load %arg3[%c0_3, %c0_4] : memref<1x16xf32, #tpu.memory_space<vmem>>, vector<1x16xf32>
    %6 = vector.broadcast %5 : vector<1x16xf32> to vector<16x16xf32>
    %7 = arith.addf %4, %6 : vector<16x16xf32>
    %cst = arith.constant 0.000000e+00 : f32
    %8 = vector.broadcast %cst : f32 to vector<16x16xf32>
    %9 = arith.cmpf oge, %7, %8 : vector<16x16xf32>
    %cst_5 = arith.constant 2.000000e-01 : f32
    %10 = vector.broadcast %cst_5 : f32 to vector<16x16xf32>
    %11 = arith.mulf %10, %7 : vector<16x16xf32>
    %12 = arith.select %9, %7, %11 : vector<16x16xi1>, vector<16x16xf32>
    %13 = arith.truncf %12 : vector<16x16xf32> to vector<16x16xbf16>
    %c0_6 = arith.constant 0 : index
    %c0_7 = arith.constant 0 : index
    %14 = vector.load %arg4[%c0_6, %c0_7] : memref<16x16xbf16, #tpu.memory_space<vmem>>, vector<16x16xbf16>
    tpu.vector_store %arg4[%c0_6, %c0_7], %13 {strides = array<i32>} : memref<16x16xbf16, #tpu.memory_space<vmem>>, vector<16x16xbf16>,
    return
  }
  func.func @transform_0(%arg0: i32) -> (i32, i32) {
    %c0_i32 = arith.constant 0 : i32
    %c0_i32_0 = arith.constant 0 : i32
    return %arg0, %c0_i32 : i32, i32
  }
  func.func @transform_1(%arg0: i32) -> (i32, i32) {
    %c0_i32 = arith.constant 0 : i32
    %c0_i32_0 = arith.constant 0 : i32
    %c0_i32_1 = arith.constant 0 : i32
    return %c0_i32, %c0_i32_0 : i32, i32
  }
  func.func @transform_2(%arg0: i32) -> (i32, i32) {
    %c0_i32 = arith.constant 0 : i32
    %c0_i32_0 = arith.constant 0 : i32
    %c0_i32_1 = arith.constant 0 : i32
    return %c0_i32, %c0_i32_0 : i32, i32
  }
  func.func @transform_3(%arg0: i32) -> (i32, i32) {
    %c0_i32 = arith.constant 0 : i32
    %c0_i32_0 = arith.constant 0 : i32
    return %arg0, %c0_i32 : i32, i32
  }
}

module attributes {stable_mosaic.version = 11 : i64} {
  func.func @_scale_shift_act_kernel(%arg0: i32, %arg1: memref<8x32xbf16, #tpu.memory_space<vmem>>, %arg2: memref<1x32xf32, #tpu.memory_space<vmem>>, %arg3: memref<1x32xf32, #tpu.memory_space<vmem>>, %arg4: memref<8x32xbf16, #tpu.memory_space<vmem>>) attributes {dimension_semantics = [#tpu.dimension_semantics<parallel>], iteration_bounds = array<i64: 1>, scalar_prefetch = 0 : i64, scratch_operands = 0 : i64, tpu.core_type = #tpu.core_type<tc>, window_params = [{transform_indices = @transform_0, window_bounds = array<i64: 8, 32>}, {pipeline_mode = #tpu.pipeline_mode<synchronous>, transform_indices = @transform_1, window_bounds = array<i64: 1, 32>}, {pipeline_mode = #tpu.pipeline_mode<synchronous>, transform_indices = @transform_2, window_bounds = array<i64: 1, 32>}, {transform_indices = @transform_3, window_bounds = array<i64: 8, 32>}]} {
    %c0 = arith.constant 0 : index
    %c0_0 = arith.constant 0 : index
    %0 = vector.load %arg1[%c0, %c0_0] : memref<8x32xbf16, #tpu.memory_space<vmem>>, vector<8x32xbf16>
    %1 = arith.extf %0 : vector<8x32xbf16> to vector<8x32xf32>
    %c0_1 = arith.constant 0 : index
    %c0_2 = arith.constant 0 : index
    %2 = vector.load %arg2[%c0_1, %c0_2] : memref<1x32xf32, #tpu.memory_space<vmem>>, vector<1x32xf32>
    %3 = vector.broadcast %2 : vector<1x32xf32> to vector<8x32xf32>
    %4 = arith.mulf %1, %3 : vector<8x32xf32>
    %c0_3 = arith.constant 0 : index
    %c0_4 = arith.constant 0 : index
    %5 = vector.load %arg3[%c0_3, %c0_4] : memref<1x32xf32, #tpu.memory_space<vmem>>, vector<1x32xf32>
    %6 = vector.broadcast %5 : vector<1x32xf32> to vector<8x32xf32>
    %7 = arith.addf %4, %6 : vector<8x32xf32>
    %cst = arith.constant 0.000000e+00 : f32
    %8 = vector.broadcast %cst : f32 to vector<8x32xf32>
    %9 = arith.cmpf oge, %7, %8 : vector<8x32xf32>
    %cst_5 = arith.constant 2.000000e-01 : f32
    %10 = vector.broadcast %cst_5 : f32 to vector<8x32xf32>
    %11 = arith.mulf %10, %7 : vector<8x32xf32>
    %12 = arith.select %9, %7, %11 : vector<8x32xi1>, vector<8x32xf32>
    %13 = arith.truncf %12 : vector<8x32xf32> to vector<8x32xbf16>
    %c0_6 = arith.constant 0 : index
    %c0_7 = arith.constant 0 : index
    %14 = vector.load %arg4[%c0_6, %c0_7] : memref<8x32xbf16, #tpu.memory_space<vmem>>, vector<8x32xbf16>
    tpu.vector_store %arg4[%c0_6, %c0_7], %13 {strides = array<i32>} : memref<8x32xbf16, #tpu.memory_space<vmem>>, vector<8x32xbf16>,
    return
  }
  func.func @transform_0(%arg0: i32) -> (i32, i32) {
    %c0_i32 = arith.constant 0 : i32
    %c0_i32_0 = arith.constant 0 : i32
    return %arg0, %c0_i32 : i32, i32
  }
  func.func @transform_1(%arg0: i32) -> (i32, i32) {
    %c0_i32 = arith.constant 0 : i32
    %c0_i32_0 = arith.constant 0 : i32
    %c0_i32_1 = arith.constant 0 : i32
    return %c0_i32, %c0_i32_0 : i32, i32
  }
  func.func @transform_2(%arg0: i32) -> (i32, i32) {
    %c0_i32 = arith.constant 0 : i32
    %c0_i32_0 = arith.constant 0 : i32
    %c0_i32_1 = arith.constant 0 : i32
    return %c0_i32, %c0_i32_0 : i32, i32
  }
  func.func @transform_3(%arg0: i32) -> (i32, i32) {
    %c0_i32 = arith.constant 0 : i32
    %c0_i32_0 = arith.constant 0 : i32
    return %arg0, %c0_i32 : i32, i32
  }
}

module attributes {stable_mosaic.version = 11 : i64} {
  func.func @_gemm_kernel(%arg0: i32, %arg1: i32, %arg2: i32, %arg3: memref<8x1024xbf16, #tpu.memory_space<vmem>>, %arg4: memref<1024x32xbf16, #tpu.memory_space<vmem>>, %arg5: memref<1x32xf32, #tpu.memory_space<vmem>>, %arg6: memref<8x32xbf16, #tpu.memory_space<vmem>>, %arg7: memref<1x1x32xf32, #tpu.memory_space<vmem>>, %arg8: memref<1x1x32xf32, #tpu.memory_space<vmem>>, %arg9: memref<8x32xf32, #tpu.memory_space<vmem>>) attributes {dimension_semantics = [#tpu.dimension_semantics<parallel>, #tpu.dimension_semantics<parallel>, #tpu.dimension_semantics<arbitrary>], iteration_bounds = array<i64: 1, 1, 1>, scalar_prefetch = 0 : i64, scratch_operands = 1 : i64, tpu.core_type = #tpu.core_type<tc>, window_params = [{transform_indices = @transform_0, window_bounds = array<i64: 8, 1024>}, {transform_indices = @transform_1, window_bounds = array<i64: 1024, 32>}, {transform_indices = @transform_2, window_bounds = array<i64: 1, 32>}, {transform_indices = @transform_3, window_bounds = array<i64: 8, 32>}, {transform_indices = @transform_4, window_bounds = array<i64: 1, 1, 32>}, {transform_indices = @transform_5, window_bounds = array<i64: 1, 1, 32>}]} {
    %c0_i32 = arith.constant 0 : i32
    %0 = arith.cmpi eq, %arg2, %c0_i32 : i32
    %1 = arith.extui %0 : i1 to i32
    %c0_i32_0 = arith.constant 0 : i32
    %2 = arith.cmpi ne, %1, %c0_i32_0 : i32
    scf.if %2 {
      %cst_10 = arith.constant 0.000000e+00 : f32
      %12 = vector.broadcast %cst_10 : f32 to vector<8x32xf32>
      %c0_11 = arith.constant 0 : index
      %c0_12 = arith.constant 0 : index
      %13 = vector.load %arg9[%c0_11, %c0_12] : memref<8x32xf32, #tpu.memory_space<vmem>>, vector<8x32xf32>
      tpu.vector_store %arg9[%c0_11, %c0_12], %12 {strides = array<i32>} : memref<8x32xf32, #tpu.memory_space<vmem>>, vector<8x32xf32>,
    } else {
    }
    %c0 = arith.constant 0 : index
    %c0_1 = arith.constant 0 : index
    %3 = vector.load %arg9[%c0, %c0_1] : memref<8x32xf32, #tpu.memory_space<vmem>>, vector<8x32xf32>
    %c0_2 = arith.constant 0 : index
    %c0_3 = arith.constant 0 : index
    %4 = vector.load %arg3[%c0_2, %c0_3] : memref<8x1024xbf16, #tpu.memory_space<vmem>>, vector<8x1024xbf16>
    %c0_4 = arith.constant 0 : index
    %c0_5 = arith.constant 0 : index
    %5 = vector.load %arg4[%c0_4, %c0_5] : memref<1024x32xbf16, #tpu.memory_space<vmem>>, vector<1024x32xbf16>
    %cst = arith.constant dense<0.000000e+00> : vector<8x32xf32>
    %6 = tpu.matmul %4, %5, %cst {dimension_numbers = #tpu.dot_dimension_numbers<[1], [0], [0], [1], [0, 0, 1, 1], [], []>} : vector<8x1024xbf16>, vector<1024x32xbf16>, vector<8x32xf32> -> vector<8x32xf32>
    %7 = arith.addf %3, %6 : vector<8x32xf32>
    %c0_6 = arith.constant 0 : index
    %c0_7 = arith.constant 0 : index
    %8 = vector.load %arg9[%c0_6, %c0_7] : memref<8x32xf32, #tpu.memory_space<vmem>>, vector<8x32xf32>
    tpu.vector_store %arg9[%c0_6, %c0_7], %7 {strides = array<i32>} : memref<8x32xf32, #tpu.memory_space<vmem>>, vector<8x32xf32>,
    %c0_i32_8 = arith.constant 0 : i32
    %9 = arith.cmpi eq, %arg2, %c0_i32_8 : i32
    %10 = arith.extui %9 : i1 to i32
    %c0_i32_9 = arith.constant 0 : i32
    %11 = arith.cmpi ne, %10, %c0_i32_9 : i32
    scf.if %11 {
      %c0_10 = arith.constant 0 : index
      %c0_11 = arith.constant 0 : index
      %12 = vector.load %arg9[%c0_10, %c0_11] : memref<8x32xf32, #tpu.memory_space<vmem>>, vector<8x32xf32>
      %cst_12 = arith.constant dense<0.000000e+00> : vector<32xf32>
      %13 = vector.multi_reduction <add>, %12, %cst_12 [0] : vector<8x32xf32> to vector<32xf32>
      %14 = vector.shape_cast %13 : vector<32xf32> to vector<1x32xf32>
      %15 = vector.shape_cast %14 : vector<1x32xf32> to vector<1x1x32xf32>
      %c0_13 = arith.constant 0 : index
      %c0_14 = arith.constant 0 : index
      %c0_15 = arith.constant 0 : index
      %16 = vector.load %arg7[%c0_13, %c0_14, %c0_15] : memref<1x1x32xf32, #tpu.memory_space<vmem>>, vector<1x1x32xf32>
      tpu.vector_store %arg7[%c0_13, %c0_14, %c0_15], %15 {strides = array<i32>} : memref<1x1x32xf32, #tpu.memory_space<vmem>>, vector<1x1x32xf32>,
      %17 = arith.mulf %12, %12 : vector<8x32xf32>
      %cst_16 = arith.constant dense<0.000000e+00> : vector<32xf32>
      %18 = vector.multi_reduction <add>, %17, %cst_16 [0] : vector<8x32xf32> to vector<32xf32>
      %19 = vector.shape_cast %18 : vector<32xf32> to vector<1x32xf32>
      %20 = vector.shape_cast %19 : vector<1x32xf32> to vector<1x1x32xf32>
      %c0_17 = arith.constant 0 : index
      %c0_18 = arith.constant 0 : index
      %c0_19 = arith.constant 0 : index
      %21 = vector.load %arg8[%c0_17, %c0_18, %c0_19] : memref<1x1x32xf32, #tpu.memory_space<vmem>>, vector<1x1x32xf32>
      tpu.vector_store %arg8[%c0_17, %c0_18, %c0_19], %20 {strides = array<i32>} : memref<1x1x32xf32, #tpu.memory_space<vmem>>, vector<1x1x32xf32>,
      %c0_20 = arith.constant 0 : index
      %c0_21 = arith.constant 0 : index
      %22 = vector.load %arg5[%c0_20, %c0_21] : memref<1x32xf32, #tpu.memory_space<vmem>>, vector<1x32xf32>
      %23 = vector.broadcast %22 : vector<1x32xf32> to vector<8x32xf32>
      %24 = arith.addf %12, %23 : vector<8x32xf32>
      %25 = arith.truncf %24 : vector<8x32xf32> to vector<8x32xbf16>
      %c0_22 = arith.constant 0 : index
      %c0_23 = arith.constant 0 : index
      %26 = vector.load %arg6[%c0_22, %c0_23] : memref<8x32xbf16, #tpu.memory_space<vmem>>, vector<8x32xbf16>
      tpu.vector_store %arg6[%c0_22, %c0_23], %25 {strides = array<i32>} : memref<8x32xbf16, #tpu.memory_space<vmem>>, vector<8x32xbf16>,
    } else {
    }
    return
  }
  func.func @transform_0(%arg0: i32, %arg1: i32, %arg2: i32) -> (i32, i32) {
    %c0_i32 = arith.constant 0 : i32
    return %arg0, %arg2 : i32, i32
  }
  func.func @transform_1(%arg0: i32, %arg1: i32, %arg2: i32) -> (i32, i32) {
    %c0_i32 = arith.constant 0 : i32
    return %arg2, %arg1 : i32, i32
  }
  func.func @transform_2(%arg0: i32, %arg1: i32, %arg2: i32) -> (i32, i32) {
    %c0_i32 = arith.constant 0 : i32
    %c0_i32_0 = arith.constant 0 : i32
    return %c0_i32, %arg1 : i32, i32
  }
  func.func @transform_3(%arg0: i32, %arg1: i32, %arg2: i32) -> (i32, i32) {
    %c0_i32 = arith.constant 0 : i32
    return %arg0, %arg1 : i32, i32
  }
  func.func @transform_4(%arg0: i32, %arg1: i32, %arg2: i32) -> (i32, i32, i32) {
    %c0_i32 = arith.constant 0 : i32
    %c0_i32_0 = arith.constant 0 : i32
    return %arg0, %c0_i32, %arg1 : i32, i32, i32
  }
  func.func @transform_5(%arg0: i32, %arg1: i32, %arg2: i32) -> (i32, i32, i32) {
    %c0_i32 = arith.constant 0 : i32
    %c0_i32_0 = arith.constant 0 : i32
    return %arg0, %c0_i32, %arg1 : i32, i32, i32
  }
}

module attributes {stable_mosaic.version = 11 : i64} {
  func.func @_scale_shift_act_kernel(%arg0: i32, %arg1: memref<16x64xbf16, #tpu.memory_space<vmem>>, %arg2: memref<1x64xf32, #tpu.memory_space<vmem>>, %arg3: memref<1x64xf32, #tpu.memory_space<vmem>>, %arg4: memref<16x64xbf16, #tpu.memory_space<vmem>>) attributes {dimension_semantics = [#tpu.dimension_semantics<parallel>], iteration_bounds = array<i64: 2>, scalar_prefetch = 0 : i64, scratch_operands = 0 : i64, tpu.core_type = #tpu.core_type<tc>, window_params = [{transform_indices = @transform_0, window_bounds = array<i64: 16, 64>}, {pipeline_mode = #tpu.pipeline_mode<synchronous>, transform_indices = @transform_1, window_bounds = array<i64: 1, 64>}, {pipeline_mode = #tpu.pipeline_mode<synchronous>, transform_indices = @transform_2, window_bounds = array<i64: 1, 64>}, {transform_indices = @transform_3, window_bounds = array<i64: 16, 64>}]} {
    %c0 = arith.constant 0 : index
    %c0_0 = arith.constant 0 : index
    %0 = vector.load %arg1[%c0, %c0_0] : memref<16x64xbf16, #tpu.memory_space<vmem>>, vector<16x64xbf16>
    %1 = arith.extf %0 : vector<16x64xbf16> to vector<16x64xf32>
    %c0_1 = arith.constant 0 : index
    %c0_2 = arith.constant 0 : index
    %2 = vector.load %arg2[%c0_1, %c0_2] : memref<1x64xf32, #tpu.memory_space<vmem>>, vector<1x64xf32>
    %3 = vector.broadcast %2 : vector<1x64xf32> to vector<16x64xf32>
    %4 = arith.mulf %1, %3 : vector<16x64xf32>
    %c0_3 = arith.constant 0 : index
    %c0_4 = arith.constant 0 : index
    %5 = vector.load %arg3[%c0_3, %c0_4] : memref<1x64xf32, #tpu.memory_space<vmem>>, vector<1x64xf32>
    %6 = vector.broadcast %5 : vector<1x64xf32> to vector<16x64xf32>
    %7 = arith.addf %4, %6 : vector<16x64xf32>
    %cst = arith.constant 0.000000e+00 : f32
    %8 = vector.broadcast %cst : f32 to vector<16x64xf32>
    %9 = arith.cmpf oge, %7, %8 : vector<16x64xf32>
    %cst_5 = arith.constant 2.000000e-01 : f32
    %10 = vector.broadcast %cst_5 : f32 to vector<16x64xf32>
    %11 = arith.mulf %10, %7 : vector<16x64xf32>
    %12 = arith.select %9, %7, %11 : vector<16x64xi1>, vector<16x64xf32>
    %13 = arith.truncf %12 : vector<16x64xf32> to vector<16x64xbf16>
    %c0_6 = arith.constant 0 : index
    %c0_7 = arith.constant 0 : index
    %14 = vector.load %arg4[%c0_6, %c0_7] : memref<16x64xbf16, #tpu.memory_space<vmem>>, vector<16x64xbf16>
    tpu.vector_store %arg4[%c0_6, %c0_7], %13 {strides = array<i32>} : memref<16x64xbf16, #tpu.memory_space<vmem>>, vector<16x64xbf16>,
    return
  }
  func.func @transform_0(%arg0: i32) -> (i32, i32) {
    %c0_i32 = arith.constant 0 : i32
    %c0_i32_0 = arith.constant 0 : i32
    return %arg0, %c0_i32 : i32, i32
  }
  func.func @transform_1(%arg0: i32) -> (i32, i32) {
    %c0_i32 = arith.constant 0 : i32
    %c0_i32_0 = arith.constant 0 : i32
    %c0_i32_1 = arith.constant 0 : i32
    return %c0_i32, %c0_i32_0 : i32, i32
  }
  func.func @transform_2(%arg0: i32) -> (i32, i32) {
    %c0_i32 = arith.constant 0 : i32
    %c0_i32_0 = arith.constant 0 : i32
    %c0_i32_1 = arith.constant 0 : i32
    return %c0_i32, %c0_i32_0 : i32, i32
  }
  func.func @transform_3(%arg0: i32) -> (i32, i32) {
    %c0_i32 = arith.constant 0 : i32
    %c0_i32_0 = arith.constant 0 : i32
    return %arg0, %c0_i32 : i32, i32
  }
}

module attributes {stable_mosaic.version = 11 : i64} {
  func.func @_gemm_kernel(%arg0: i32, %arg1: i32, %arg2: i32, %arg3: memref<16x1024xbf16, #tpu.memory_space<vmem>>, %arg4: memref<1024x64xbf16, #tpu.memory_space<vmem>>, %arg5: memref<1x64xf32, #tpu.memory_space<vmem>>, %arg6: memref<16x64xbf16, #tpu.memory_space<vmem>>, %arg7: memref<1x1x64xf32, #tpu.memory_space<vmem>>, %arg8: memref<1x1x64xf32, #tpu.memory_space<vmem>>, %arg9: memref<16x64xf32, #tpu.memory_space<vmem>>) attributes {dimension_semantics = [#tpu.dimension_semantics<parallel>, #tpu.dimension_semantics<parallel>, #tpu.dimension_semantics<arbitrary>], iteration_bounds = array<i64: 2, 1, 2>, scalar_prefetch = 0 : i64, scratch_operands = 1 : i64, tpu.core_type = #tpu.core_type<tc>, window_params = [{transform_indices = @transform_0, window_bounds = array<i64: 16, 1024>}, {transform_indices = @transform_1, window_bounds = array<i64: 1024, 64>}, {transform_indices = @transform_2, window_bounds = array<i64: 1, 64>}, {transform_indices = @transform_3, window_bounds = array<i64: 16, 64>}, {transform_indices = @transform_4, window_bounds = array<i64: 1, 1, 64>}, {transform_indices = @transform_5, window_bounds = array<i64: 1, 1, 64>}]} {
    %c0_i32 = arith.constant 0 : i32
    %0 = arith.cmpi eq, %arg2, %c0_i32 : i32
    %1 = arith.extui %0 : i1 to i32
    %c0_i32_0 = arith.constant 0 : i32
    %2 = arith.cmpi ne, %1, %c0_i32_0 : i32
    scf.if %2 {
      %cst_9 = arith.constant 0.000000e+00 : f32
      %12 = vector.broadcast %cst_9 : f32 to vector<16x64xf32>
      %c0_10 = arith.constant 0 : index
      %c0_11 = arith.constant 0 : index
      %13 = vector.load %arg9[%c0_10, %c0_11] : memref<16x64xf32, #tpu.memory_space<vmem>>, vector<16x64xf32>
      tpu.vector_store %arg9[%c0_10, %c0_11], %12 {strides = array<i32>} : memref<16x64xf32, #tpu.memory_space<vmem>>, vector<16x64xf32>,
    } else {
    }
    %c0 = arith.constant 0 : index
    %c0_1 = arith.constant 0 : index
    %3 = vector.load %arg9[%c0, %c0_1] : memref<16x64xf32, #tpu.memory_space<vmem>>, vector<16x64xf32>
    %c0_2 = arith.constant 0 : index
    %c0_3 = arith.constant 0 : index
    %4 = vector.load %arg3[%c0_2, %c0_3] : memref<16x1024xbf16, #tpu.memory_space<vmem>>, vector<16x1024xbf16>
    %c0_4 = arith.constant 0 : index
    %c0_5 = arith.constant 0 : index
    %5 = vector.load %arg4[%c0_4, %c0_5] : memref<1024x64xbf16, #tpu.memory_space<vmem>>, vector<1024x64xbf16>
    %cst = arith.constant dense<0.000000e+00> : vector<16x64xf32>
    %6 = tpu.matmul %4, %5, %cst {dimension_numbers = #tpu.dot_dimension_numbers<[1], [0], [0], [1], [0, 0, 1, 1], [], []>} : vector<16x1024xbf16>, vector<1024x64xbf16>, vector<16x64xf32> -> vector<16x64xf32>
    %7 = arith.addf %3, %6 : vector<16x64xf32>
    %c0_6 = arith.constant 0 : index
    %c0_7 = arith.constant 0 : index
    %8 = vector.load %arg9[%c0_6, %c0_7] : memref<16x64xf32, #tpu.memory_space<vmem>>, vector<16x64xf32>
    tpu.vector_store %arg9[%c0_6, %c0_7], %7 {strides = array<i32>} : memref<16x64xf32, #tpu.memory_space<vmem>>, vector<16x64xf32>,
    %c1_i32 = arith.constant 1 : i32
    %9 = arith.cmpi eq, %arg2, %c1_i32 : i32
    %10 = arith.extui %9 : i1 to i32
    %c0_i32_8 = arith.constant 0 : i32
    %11 = arith.cmpi ne, %10, %c0_i32_8 : i32
    scf.if %11 {
      %c0_9 = arith.constant 0 : index
      %c0_10 = arith.constant 0 : index
      %12 = vector.load %arg9[%c0_9, %c0_10] : memref<16x64xf32, #tpu.memory_space<vmem>>, vector<16x64xf32>
      %cst_11 = arith.constant dense<0.000000e+00> : vector<64xf32>
      %13 = vector.multi_reduction <add>, %12, %cst_11 [0] : vector<16x64xf32> to vector<64xf32>
      %14 = vector.shape_cast %13 : vector<64xf32> to vector<1x64xf32>
      %15 = vector.shape_cast %14 : vector<1x64xf32> to vector<1x1x64xf32>
      %c0_12 = arith.constant 0 : index
      %c0_13 = arith.constant 0 : index
      %c0_14 = arith.constant 0 : index
      %16 = vector.load %arg7[%c0_12, %c0_13, %c0_14] : memref<1x1x64xf32, #tpu.memory_space<vmem>>, vector<1x1x64xf32>
      tpu.vector_store %arg7[%c0_12, %c0_13, %c0_14], %15 {strides = array<i32>} : memref<1x1x64xf32, #tpu.memory_space<vmem>>, vector<1x1x64xf32>,
      %17 = arith.mulf %12, %12 : vector<16x64xf32>
      %cst_15 = arith.constant dense<0.000000e+00> : vector<64xf32>
      %18 = vector.multi_reduction <add>, %17, %cst_15 [0] : vector<16x64xf32> to vector<64xf32>
      %19 = vector.shape_cast %18 : vector<64xf32> to vector<1x64xf32>
      %20 = vector.shape_cast %19 : vector<1x64xf32> to vector<1x1x64xf32>
      %c0_16 = arith.constant 0 : index
      %c0_17 = arith.constant 0 : index
      %c0_18 = arith.constant 0 : index
      %21 = vector.load %arg8[%c0_16, %c0_17, %c0_18] : memref<1x1x64xf32, #tpu.memory_space<vmem>>, vector<1x1x64xf32>
      tpu.vector_store %arg8[%c0_16, %c0_17, %c0_18], %20 {strides = array<i32>} : memref<1x1x64xf32, #tpu.memory_space<vmem>>, vector<1x1x64xf32>,
      %c0_19 = arith.constant 0 : index
      %c0_20 = arith.constant 0 : index
      %22 = vector.load %arg5[%c0_19, %c0_20] : memref<1x64xf32, #tpu.memory_space<vmem>>, vector<1x64xf32>
      %23 = vector.broadcast %22 : vector<1x64xf32> to vector<16x64xf32>
      %24 = arith.addf %12, %23 : vector<16x64xf32>
      %25 = arith.truncf %24 : vector<16x64xf32> to vector<16x64xbf16>
      %c0_21 = arith.constant 0 : index
      %c0_22 = arith.constant 0 : index
      %26 = vector.load %arg6[%c0_21, %c0_22] : memref<16x64xbf16, #tpu.memory_space<vmem>>, vector<16x64xbf16>
      tpu.vector_store %arg6[%c0_21, %c0_22], %25 {strides = array<i32>} : memref<16x64xbf16, #tpu.memory_space<vmem>>, vector<16x64xbf16>,
    } else {
    }
    return
  }
  func.func @transform_0(%arg0: i32, %arg1: i32, %arg2: i32) -> (i32, i32) {
    %c0_i32 = arith.constant 0 : i32
    return %arg0, %arg2 : i32, i32
  }
  func.func @transform_1(%arg0: i32, %arg1: i32, %arg2: i32) -> (i32, i32) {
    %c0_i32 = arith.constant 0 : i32
    return %arg2, %arg1 : i32, i32
  }
  func.func @transform_2(%arg0: i32, %arg1: i32, %arg2: i32) -> (i32, i32) {
    %c0_i32 = arith.constant 0 : i32
    %c0_i32_0 = arith.constant 0 : i32
    return %c0_i32, %arg1 : i32, i32
  }
  func.func @transform_3(%arg0: i32, %arg1: i32, %arg2: i32) -> (i32, i32) {
    %c0_i32 = arith.constant 0 : i32
    return %arg0, %arg1 : i32, i32
  }
  func.func @transform_4(%arg0: i32, %arg1: i32, %arg2: i32) -> (i32, i32, i32) {
    %c0_i32 = arith.constant 0 : i32
    %c0_i32_0 = arith.constant 0 : i32
    return %arg0, %c0_i32, %arg1 : i32, i32, i32
  }
  func.func @transform_5(%arg0: i32, %arg1: i32, %arg2: i32) -> (i32, i32, i32) {
    %c0_i32 = arith.constant 0 : i32
    %c0_i32_0 = arith.constant 0 : i32
    return %arg0, %c0_i32, %arg1 : i32, i32, i32
  }
}

module attributes {stable_mosaic.version = 11 : i64} {
  func.func @_gemm_kernel(%arg0: i32, %arg1: i32, %arg2: i32, %arg3: memref<32x1024xbf16, #tpu.memory_space<vmem>>, %arg4: memref<1024x1xbf16, #tpu.memory_space<vmem>>, %arg5: memref<1x1xf32, #tpu.memory_space<vmem>>, %arg6: memref<32x1xf32, #tpu.memory_space<vmem>>, %arg7: memref<32x1xf32, #tpu.memory_space<vmem>>) attributes {dimension_semantics = [#tpu.dimension_semantics<parallel>, #tpu.dimension_semantics<parallel>, #tpu.dimension_semantics<arbitrary>], iteration_bounds = array<i64: 2, 1, 4>, scalar_prefetch = 0 : i64, scratch_operands = 1 : i64, tpu.core_type = #tpu.core_type<tc>, window_params = [{transform_indices = @transform_0, window_bounds = array<i64: 32, 1024>}, {transform_indices = @transform_1, window_bounds = array<i64: 1024, 1>}, {transform_indices = @transform_2, window_bounds = array<i64: 1, 1>}, {transform_indices = @transform_3, window_bounds = array<i64: 32, 1>}]} {
    %c0_i32 = arith.constant 0 : i32
    %0 = arith.cmpi eq, %arg2, %c0_i32 : i32
    %1 = arith.extui %0 : i1 to i32
    %c0_i32_0 = arith.constant 0 : i32
    %2 = arith.cmpi ne, %1, %c0_i32_0 : i32
    scf.if %2 {
      %cst_9 = arith.constant 0.000000e+00 : f32
      %12 = vector.broadcast %cst_9 : f32 to vector<32x1xf32>
      %c0_10 = arith.constant 0 : index
      %c0_11 = arith.constant 0 : index
      %13 = vector.load %arg7[%c0_10, %c0_11] : memref<32x1xf32, #tpu.memory_space<vmem>>, vector<32x1xf32>
      tpu.vector_store %arg7[%c0_10, %c0_11], %12 {strides = array<i32>} : memref<32x1xf32, #tpu.memory_space<vmem>>, vector<32x1xf32>,
    } else {
    }
    %c0 = arith.constant 0 : index
    %c0_1 = arith.constant 0 : index
    %3 = vector.load %arg7[%c0, %c0_1] : memref<32x1xf32, #tpu.memory_space<vmem>>, vector<32x1xf32>
    %c0_2 = arith.constant 0 : index
    %c0_3 = arith.constant 0 : index
    %4 = vector.load %arg3[%c0_2, %c0_3] : memref<32x1024xbf16, #tpu.memory_space<vmem>>, vector<32x1024xbf16>
    %c0_4 = arith.constant 0 : index
    %c0_5 = arith.constant 0 : index
    %5 = vector.load %arg4[%c0_4, %c0_5] : memref<1024x1xbf16, #tpu.memory_space<vmem>>, vector<1024x1xbf16>
    %cst = arith.constant dense<0.000000e+00> : vector<32x1xf32>
    %6 = tpu.matmul %4, %5, %cst {dimension_numbers = #tpu.dot_dimension_numbers<[1], [0], [0], [1], [0, 0, 1, 1], [], []>} : vector<32x1024xbf16>, vector<1024x1xbf16>, vector<32x1xf32> -> vector<32x1xf32>
    %7 = arith.addf %3, %6 : vector<32x1xf32>
    %c0_6 = arith.constant 0 : index
    %c0_7 = arith.constant 0 : index
    %8 = vector.load %arg7[%c0_6, %c0_7] : memref<32x1xf32, #tpu.memory_space<vmem>>, vector<32x1xf32>
    tpu.vector_store %arg7[%c0_6, %c0_7], %7 {strides = array<i32>} : memref<32x1xf32, #tpu.memory_space<vmem>>, vector<32x1xf32>,
    %c3_i32 = arith.constant 3 : i32
    %9 = arith.cmpi eq, %arg2, %c3_i32 : i32
    %10 = arith.extui %9 : i1 to i32
    %c0_i32_8 = arith.constant 0 : i32
    %11 = arith.cmpi ne, %10, %c0_i32_8 : i32
    scf.if %11 {
      %c0_9 = arith.constant 0 : index
      %c0_10 = arith.constant 0 : index
      %12 = vector.load %arg7[%c0_9, %c0_10] : memref<32x1xf32, #tpu.memory_space<vmem>>, vector<32x1xf32>
      %c0_11 = arith.constant 0 : index
      %c0_12 = arith.constant 0 : index
      %13 = vector.load %arg5[%c0_11, %c0_12] : memref<1x1xf32, #tpu.memory_space<vmem>>, vector<1x1xf32>
      %14 = vector.broadcast %13 : vector<1x1xf32> to vector<32x1xf32>
      %15 = arith.addf %12, %14 : vector<32x1xf32>
      %c0_13 = arith.constant 0 : index
      %c0_14 = arith.constant 0 : index
      %16 = vector.load %arg6[%c0_13, %c0_14] : memref<32x1xf32, #tpu.memory_space<vmem>>, vector<32x1xf32>
      tpu.vector_store %arg6[%c0_13, %c0_14], %15 {strides = array<i32>} : memref<32x1xf32, #tpu.memory_space<vmem>>, vector<32x1xf32>,
    } else {
    }
    return
  }
  func.func @transform_0(%arg0: i32, %arg1: i32, %arg2: i32) -> (i32, i32) {
    %c0_i32 = arith.constant 0 : i32
    return %arg0, %arg2 : i32, i32
  }
  func.func @transform_1(%arg0: i32, %arg1: i32, %arg2: i32) -> (i32, i32) {
    %c0_i32 = arith.constant 0 : i32
    return %arg2, %arg1 : i32, i32
  }
  func.func @transform_2(%arg0: i32, %arg1: i32, %arg2: i32) -> (i32, i32) {
    %c0_i32 = arith.constant 0 : i32
    %c0_i32_0 = arith.constant 0 : i32
    return %c0_i32, %arg1 : i32, i32
  }
  func.func @transform_3(%arg0: i32, %arg1: i32, %arg2: i32) -> (i32, i32) {
    %c0_i32 = arith.constant 0 : i32
    return %arg0, %arg1 : i32, i32
  }
}

</mosaic_0001>

<bundles_post_ra>
// kernel: nlayer_3d_discriminator_forward.8
= control target key start
LH: loop header
LB: loop body
LE: loop exit
PB: predicated region body
PF: predicated region fallthrough
CT: control target
= control target key end

     0   :  { %s837_s12 = smov 0   ;;  %s839_s13 = smov 0   ;;  %s944_s0 = inlined_call_operand.vmem [shape: bf16[128,128], index: 0, kind: input, shape index: {}]   ;;  %s945_s1 = inlined_call_operand.vmem [shape: bf16[128,8], index: 1, kind: input, shape index: {}]   ;;  %s946_s2 = inlined_call_operand.vmem [shape: f32[1,8], index: 2, kind: input, shape index: {}]   ;;  %s947_s3 = inlined_call_operand.vmem [shape: bf16[128,8], index: 3, kind: output, shape index: {}]  }
   0x1   :  { %s841_s14 = smov 0  }
   0x2 LB: > { %s32_s15 = sadd.s32 1, %s810_s13  ;;  %p667_p0 = scmp.ge.s32.totalorder %s814_s14, 1  ;;  %s814_s14 = sphi %s841_s14, %s13_s14   ;;  %s810_s13 = sphi %s839_s13, %s949_s13   ;;  %s806_s12 = sphi %s837_s12, %s948_s12  }
   0x3   : > { %p34_p1 = scmp.ge.s32.totalorder %s32_s15, 2  ;;  %p188_p2 = scmp.lt.s32.totalorder %s814_s14, 3 }
   0x5   : > { %s951_s15 = smov (%p34_p1, %s32_s15), 0  ;;  %p189_p3 = pnand %p667_p0, %p188_p2 }
   0x6   : > { %s668_s18 = sshll.u32 (!%p189_p3), %s806_s12, 3 }
   0x7   : > { %192 = sbr.rel (%p189_p3) target bundleno = 265 (0x109), region = 32  ;;  %p230_p4 = scmp.lt.s32.totalorder (!%p189_p3), %s668_s18, 15 }
   0xc   : > { %v780_v0 = vld [vmem:[%s945_s1 + $0x38] sm:$0xff]   ;;  %v781_v1 = vld [vmem:[%s945_s1 + $0x30] sm:$0xff]   ;;  %vm264_vm0 = vcmask 64512   ;;  %s953_s18 = smov (!%p230_p4, %s668_s18), 15  ;;  %v782_v2 = vld [vmem:[%s945_s1 + $0x28] sm:$0xff]   ;;  %v816_v3 = vmov 0.0  }
   0xd   : > { %715 = vmatprep.subr.bf16.mxu0 %v780_v0  ;;  %739 = vmatprep.subr.bf16.mxu1 %v780_v0  ;;  %s669_s23 = sshll.u32 %s953_s18, 2  ;;  %267 = vst.msk [vmem:[#allocation2 + $0x10] sm:$0xff] %vm264_vm0, %v816_v3  ;;  %265 = vst.msk [vmem:[#allocation2] sm:$0xff] %vm264_vm0, %v816_v3  ;;  %v783_v4 = vld [vmem:[%s945_s1 + $0x20] sm:$0xff]   ;;  %v784_v7 = vld [vmem:[%s945_s1 + $0x18] sm:$0xff]   ;;  %vm541_vm3 = vcmask 60416  }
   0xe   : > { %716 = vmatpush3.bf16.msra.mxu0 %v780_v0  ;;  %747 = vmatpush3.bf16.msra.mxu1 %v780_v0  ;;  %266 = vst.msk [vmem:[#allocation2 + $0x8] sm:$0xff] %vm264_vm0, %v816_v3  ;;  %268 = vst.msk [vmem:[#allocation2 + $0x18] sm:$0xff] %vm264_vm0, %v816_v3  ;;  %s880_s26 = scalar_lea.vmem %s944_s0, %s669_s23  ;;  %v785_v8 = vld [vmem:[%s945_s1 + $0x10] sm:$0xff]   ;;  %v786_v9 = vld [vmem:[%s945_s1 + $0x8] sm:$0xff]   ;;  %s917_s17 = scalar_lea.vmem %s947_s3, %s669_s23 }
   0xf   : > { %717 = vmatprep.subr.bf16.mxu0 %v781_v1  ;;  %740 = vmatprep.subr.bf16.mxu1 %v781_v1  ;;  %269 = vst.msk [vmem:[#allocation2 + $0x20] sm:$0xff] %vm264_vm0, %v816_v3  ;;  %270 = vst.msk [vmem:[#allocation2 + $0x28] sm:$0xff] %vm264_vm0, %v816_v3  ;;  %v788_v5 = vld [vmem:[%s880_s26] sm:$0xff]   ;;  %v789_v6 = vld [vmem:[%s880_s26 + $0x10] sm:$0xff]  }
  0x10   : > { %271 = vst.msk [vmem:[#allocation2 + $0x30] sm:$0xff] %vm264_vm0, %v816_v3  ;;  %272 = vst.msk [vmem:[#allocation2 + $0x38] sm:$0xff] %vm264_vm0, %v816_v3  ;;  %731 = vmatprep.mubr.bf16.mxu0 %v788_v5  ;;  %735 = vmatprep.mubr.bf16.mxu1 %v789_v6  ;;  %v787_v10 = vld [vmem:[%s945_s1] sm:$0xff]   ;;  %v790_v11 = vld [vmem:[%s880_s26 + $0x8] sm:$0xff]  }
  0x11   : > { %v791_v12 = vld [vmem:[%s880_s26 + $0x18] sm:$0xff]   ;;  %v684_v37 = vld [vmem:[%s946_s2] ss:$0 sm:$0xff] }
  0x12   : > { %718 = vmatpush3.bf16.msra.mxu0 %v781_v1  ;;  %748 = vmatpush3.bf16.msra.mxu1 %v781_v1 }
  0x13   : > { %719 = vmatprep.subr.bf16.mxu0 %v782_v2  ;;  %741 = vmatprep.subr.bf16.mxu1 %v782_v2 }
  0x14   : > { %v275_v13 = vld [vmem:[#allocation2 + $0x10] sm:$0xff]  ;;  %v273_v17 = vld [vmem:[#allocation2] sm:$0xff] }
  0x15   : > { %v276_v23 = vld [vmem:[#allocation2 + $0x18] sm:$0xff]  ;;  %v274_v29 = vld [vmem:[#allocation2 + $0x8] sm:$0xff] }
  0x16   : > { %720 = vmatpush3.bf16.msra.mxu0 %v782_v2  ;;  %749 = vmatpush3.bf16.msra.mxu1 %v782_v2  ;;  %v277_v18 = vld [vmem:[#allocation2 + $0x20] sm:$0xff]  ;;  %v278_v30 = vld [vmem:[#allocation2 + $0x28] sm:$0xff] }
  0x17   : > { %721 = vmatprep.subr.bf16.mxu0 %v783_v4  ;;  %742 = vmatprep.subr.bf16.mxu1 %v783_v4  ;;  %v279_v14 = vld [vmem:[#allocation2 + $0x30] sm:$0xff]  ;;  %v280_v24 = vld [vmem:[#allocation2 + $0x38] sm:$0xff] }
  0x1a   : > { %722 = vmatpush3.bf16.msra.mxu0 %v783_v4  ;;  %750 = vmatpush3.bf16.msra.mxu1 %v783_v4 }
  0x1b   : > { %723 = vmatprep.subr.bf16.mxu0 %v784_v7  ;;  %743 = vmatprep.subr.bf16.mxu1 %v784_v7 }
  0x1e   : > { %724 = vmatpush3.bf16.msra.mxu0 %v784_v7  ;;  %751 = vmatpush3.bf16.msra.mxu1 %v784_v7 }
  0x1f   : > { %725 = vmatprep.subr.bf16.mxu0 %v785_v8  ;;  %744 = vmatprep.subr.bf16.mxu1 %v785_v8 }
  0x22   : > { %726 = vmatpush3.bf16.msra.mxu0 %v785_v8  ;;  %752 = vmatpush3.bf16.msra.mxu1 %v785_v8 }
  0x23   : > { %727 = vmatprep.subr.bf16.mxu0 %v786_v9  ;;  %745 = vmatprep.subr.bf16.mxu1 %v786_v9 }
  0x26   : > { %728 = vmatpush3.bf16.msra.mxu0 %v786_v9  ;;  %753 = vmatpush3.bf16.msra.mxu1 %v786_v9 }
  0x27   : > { %729 = vmatprep.subr.bf16.mxu0 %v787_v10  ;;  %746 = vmatprep.subr.bf16.mxu1 %v787_v10 }
  0x2a   : > { %730 = vmatpush3.bf16.msra.mxu0 %v787_v10  ;;  %754 = vmatpush3.bf16.msra.mxu1 %v787_v10 }
  0x2d   : > { %732 = vmatmul.mubr.bf16.vlgmr.msra.gmra.mxu0 %v790_v11  ;;  %736 = vmatmul.mubr.bf16.vlgmr.msra.gmra.mxu1 %v791_v12 }
  0xed   : > { %v733_v15 = vpop.f32.mrf.mxu0  ;;  %v737_v16 = vpop.f32.mrf.mxu1 }
  0xee   : > { %v444_v19 = vadd.f32 %v733_v15, %v275_v13  ;;  %v448_v20 = vadd.f32 %v737_v16, %v279_v14 }
  0xef   : > { %v411_v21 = vpop.f32.mrf.mxu0  ;;  %v427_v22 = vpop.f32.mrf.mxu1 }
  0xf0   : > { %453 = vst.msk [vmem:[#allocation2 + $0x10] sm:$0xff] %vm264_vm0, %v444_v19  ;;  %457 = vst.msk [vmem:[#allocation2 + $0x30] sm:$0xff] %vm264_vm0, %v448_v20  ;;  %v442_v25 = vadd.f32 %v411_v21, %v273_v17  ;;  %v446_v26 = vadd.f32 %v427_v22, %v277_v18 }
  0xf1   : > { %v734_v27 = vpop.f32.mrf.mxu0  ;;  %v738_v28 = vpop.f32.mrf.mxu1 }
  0xf2   : > { %451 = vst.msk [vmem:[#allocation2] sm:$0xff] %vm264_vm0, %v442_v25  ;;  %455 = vst.msk [vmem:[#allocation2 + $0x20] sm:$0xff] %vm264_vm0, %v446_v26  ;;  %v445_v31 = vadd.f32 %v734_v27, %v276_v23  ;;  %v449_v32 = vadd.f32 %v738_v28, %v280_v24 }
  0xf3   : > { %v414_v33 = vpop.f32.mrf.mxu0  ;;  %v430_v34 = vpop.f32.mrf.mxu1 }
  0xf4   : > { %454 = vst.msk [vmem:[#allocation2 + $0x18] sm:$0xff] %vm264_vm0, %v445_v31  ;;  %458 = vst.msk [vmem:[#allocation2 + $0x38] sm:$0xff] %vm264_vm0, %v449_v32  ;;  %v443_v35 = vadd.f32 %v414_v33, %v274_v29  ;;  %v447_v36 = vadd.f32 %v430_v34, %v278_v30 }
  0xf6   : > { %452 = vst.msk [vmem:[#allocation2 + $0x8] sm:$0xff] %vm264_vm0, %v443_v35  ;;  %456 = vst.msk [vmem:[#allocation2 + $0x28] sm:$0xff] %vm264_vm0, %v447_v36 }
  0xf7   : > { %v464_v38 = vld [vmem:[#allocation2 + $0x10] sm:$0xff] }
  0xf8   : > { %v468_v39 = vld [vmem:[#allocation2 + $0x30] sm:$0xff]  ;;  %v479_v40 = vadd.f32 %v684_v37, %v464_v38 }
  0xf9   : > { %v483_v41 = vadd.f32 %v684_v37, %v468_v39  ;;  %v462_v42 = vld [vmem:[#allocation2] sm:$0xff] }
  0xfa   : > { %v466_v43 = vld [vmem:[#allocation2 + $0x20] sm:$0xff]  ;;  %vm487_vm1 = vcmp.ge.f32.partialorder %v479_v40, 0.0  ;;  %v495_v44 = vmul.f32 0.2, %v479_v40  ;;  %v477_v46 = vadd.f32 %v684_v37, %v462_v42 }
  0xfb   : > { %vm491_vm2 = vcmp.ge.f32.partialorder %v483_v41, 0.0  ;;  %v499_v45 = vmul.f32 0.2, %v483_v41  ;;  %v481_v47 = vadd.f32 %v684_v37, %v466_v43  ;;  %v465_v48 = vld [vmem:[#allocation2 + $0x18] sm:$0xff] }
  0xfc   : > { %v469_v49 = vld [vmem:[#allocation2 + $0x38] sm:$0xff]  ;;  %v503_v50 = vsel %vm487_vm1, %v479_v40, %v495_v44  ;;  %v480_v52 = vadd.f32 %v684_v37, %v465_v48  ;;  %vm485_vm4 = vcmp.ge.f32.partialorder %v477_v46, 0.0  ;;  %v493_v56 = vmul.f32 0.2, %v477_v46 }
  0xfd   : > { %v507_v51 = vsel %vm491_vm2, %v483_v41, %v499_v45  ;;  %v484_v53 = vadd.f32 %v684_v37, %v469_v49  ;;  %v697_v54 = vpack.c.bf16 %v503_v50, %v503_v50  ;;  %v463_v57 = vld [vmem:[#allocation2 + $0x8] sm:$0xff]  ;;  %vm489_vm5 = vcmp.ge.f32.partialorder %v481_v47, 0.0 }
  0xfe   : > { %v701_v55 = vpack.c.bf16 %v507_v51, %v507_v51  ;;  %v467_v58 = vld [vmem:[#allocation2 + $0x28] sm:$0xff]  ;;  %v497_v59 = vmul.f32 0.2, %v481_v47  ;;  %vm488_vm6 = vcmp.ge.f32.partialorder %v480_v52, 0.0  ;;  %v496_v60 = vmul.f32 0.2, %v480_v52 }
  0xff   : > { %544 = vst.msk [vmem:[%s917_s17 + $0x8] sm:$0xf] %vm541_vm3, %v697_v54  ;;  %v501_v61 = vsel %vm485_vm4, %v477_v46, %v493_v56  ;;  %vm492_vm7 = vcmp.ge.f32.partialorder %v484_v53, 0.0  ;;  %v500_v62 = vmul.f32 0.2, %v484_v53  ;;  %v478_v63 = vadd.f32 %v684_v37, %v463_v57 }
 0x100   : > { %548 = vst.msk [vmem:[%s917_s17 + $0x18] sm:$0xf] %vm541_vm3, %v701_v55  ;;  %v695_v0 = vpack.c.bf16 %v501_v61, %v501_v61  ;;  %v505_v1 = vsel %vm489_vm5, %v481_v47, %v497_v59  ;;  %v504_v2 = vsel %vm488_vm6, %v480_v52, %v496_v60  ;;  %v482_v3 = vadd.f32 %v684_v37, %v467_v58 }
 0x101   : > { %v699_v4 = vpack.c.bf16 %v505_v1, %v505_v1  ;;  %v698_v5 = vpack.c.bf16 %v504_v2, %v504_v2  ;;  %v508_v6 = vsel %vm492_vm7, %v484_v53, %v500_v62  ;;  %vm486_vm8 = vcmp.ge.f32.partialorder %v478_v63, 0.0 }
 0x102   : > { %542 = vst.msk [vmem:[%s917_s17] sm:$0xf] %vm541_vm3, %v695_v0  ;;  %v702_v7 = vpack.c.bf16 %v508_v6, %v508_v6  ;;  %v494_v8 = vmul.f32 0.2, %v478_v63  ;;  %vm490_vm9 = vcmp.ge.f32.partialorder %v482_v3, 0.0 }
 0x103   : > { %v498_v9 = vmul.f32 0.2, %v482_v3  ;;  %546 = vst.msk [vmem:[%s917_s17 + $0x10] sm:$0xf] %vm541_vm3, %v699_v4  ;;  %545 = vst.msk [vmem:[%s917_s17 + $0xc] sm:$0xf] %vm541_vm3, %v698_v5 }
 0x104   : > { %549 = vst.msk [vmem:[%s917_s17 + $0x1c] sm:$0xf] %vm541_vm3, %v702_v7  ;;  %v502_v10 = vsel %vm486_vm8, %v478_v63, %v494_v8 }
 0x105   : > { %v506_v11 = vsel %vm490_vm9, %v482_v3, %v498_v9  ;;  %v696_v12 = vpack.c.bf16 %v502_v10, %v502_v10 }
 0x106   : > { %v700_v13 = vpack.c.bf16 %v506_v11, %v506_v11 }
 0x107   : > { %543 = vst.msk [vmem:[%s917_s17 + $0x4] sm:$0xf] %vm541_vm3, %v696_v12 }
 0x108   : > { %547 = vst.msk [vmem:[%s917_s17 + $0x14] sm:$0xf] %vm541_vm3, %v700_v13 }
 0x109 PF: > { %s13_s14 = sadd.s32 1, %s814_s14   ;;  %s948_s12 = smov %s810_s13 }
 0x10a   : > { %p10_p5 = scmp.ge.s32.totalorder %s13_s14, 4   ;;  %s949_s13 = smov %s951_s15 }
 0x10c   :  { %12 = sbr.rel (!%p10_p5) target bundleno = 2 (0x2), region = 76 }

// kernel: nlayer_3d_discriminator_forward.10
= control target key start
LH: loop header
LB: loop body
LE: loop exit
PB: predicated region body
PF: predicated region fallthrough
CT: control target
= control target key end

     0   :  { %s326_s12 = smov 0   ;;  %s349_s0 = inlined_call_operand.vmem [shape: bf16[32,16], index: 0, kind: input, shape index: {}]   ;;  %s350_s1 = inlined_call_operand.vmem [shape: f32[1,16], index: 1, kind: input, shape index: {}]   ;;  %s351_s2 = inlined_call_operand.vmem [shape: f32[1,16], index: 2, kind: input, shape index: {}]   ;;  %s352_s3 = inlined_call_operand.vmem [shape: bf16[32,16], index: 3, kind: output, shape index: {}]  }
   0x1 LB: > { %s269_s13 = sadd.s32 4294967295, %s304_s12   ;;  %p273_p0 = scmp.ge.s32.totalorder %s304_s12, 1  ;;  %s304_s12 = sphi %s326_s12, %s13_s12  }
   0x2   : > { %p138_p1 = scmp.lt.s32.totalorder %s304_s12, 3 }
   0x4   : > { %p139_p2 = pnand %p273_p0, %p138_p1 }
   0x5   : > { %s274_s14 = sshll.u32 (!%p139_p2), %s269_s13, 1 }
   0x6   : > { %142 = sbr.rel (%p139_p2) target bundleno = 27 (0x1b), region = 32  ;;  %p163_p3 = scmp.lt.s32.totalorder (!%p139_p2), %s274_s14, 3 }
   0xb   : > { %s354_s14 = smov (!%p163_p3, %s274_s14), 3  ;;  %v278_v1 = vld [vmem:[%s350_s1] ss:$0 sm:$0xff]  ;;  %vm210_vm2 = vcmask 125952  }
   0xc   : > { %s275_s15 = sshll.u32 %s354_s14, 2  ;;  %v279_v4 = vld [vmem:[%s351_s2] ss:$0 sm:$0xff] }
   0xd   : > { %s166_s18 = scalar_lea.vmem %s349_s0, %s275_s15  ;;  %s172_s25 = scalar_lea.vmem %s352_s3, %s275_s15 }
   0xe   : > { %v287_v0 = vld [vmem:[%s166_s18] sm:$0xff]  }
   0xf   : > { %v288_v2 = vunpack.c.l.bf16 %v287_v0  ;;  %v289_v3 = vunpack.c.h.bf16 %v287_v0 }
  0x11   : > { %v185_v5 = vmul.f32 %v288_v2, %v278_v1  ;;  %v186_v6 = vmul.f32 %v289_v3, %v278_v1 }
  0x13   : > { %v194_v7 = vadd.f32 %v279_v4, %v185_v5  ;;  %v195_v8 = vadd.f32 %v279_v4, %v186_v6 }
  0x15   : > { %vm196_vm0 = vcmp.ge.f32.partialorder %v194_v7, 0.0  ;;  %v198_v9 = vmul.f32 0.2, %v194_v7  ;;  %vm197_vm1 = vcmp.ge.f32.partialorder %v195_v8, 0.0  ;;  %v199_v10 = vmul.f32 0.2, %v195_v8 }
  0x17   : > { %v200_v11 = vsel %vm196_vm0, %v194_v7, %v198_v9  ;;  %v201_v12 = vsel %vm197_vm1, %v195_v8, %v199_v10 }
  0x18   : > { %v284_v13 = vpack.c.bf16 %v200_v11, %v200_v11  ;;  %v285_v14 = vpack.c.bf16 %v201_v12, %v201_v12 }
  0x1a   : > { %211 = vst.msk [vmem:[%s172_s25] sm:$0xf] %vm210_vm2, %v284_v13  ;;  %212 = vst.msk [vmem:[%s172_s25 + $0x4] sm:$0xf] %vm210_vm2, %v285_v14 }
  0x1b PF: > { %s13_s12 = sadd.s32 1, %s304_s12  }
  0x1c   : > { %p10_p4 = scmp.ge.s32.totalorder %s13_s12, 4  }
  0x1e   :  { %12 = sbr.rel (!%p10_p4) target bundleno = 1 (0x1), region = 62 }

// kernel: nlayer_3d_discriminator_forward.9
= control target key start
LH: loop header
LB: loop body
LE: loop exit
PB: predicated region body
PF: predicated region fallthrough
CT: control target
= control target key end

     0   :  { %s1181_s18 = smov 0   ;;  %s1183_s19 = smov 0   ;;  %s1338_s0 = inlined_call_operand.vmem [shape: bf16[32,512], index: 0, kind: input, shape index: {}]   ;;  %s1339_s1 = inlined_call_operand.vmem [shape: bf16[512,16], index: 1, kind: input, shape index: {}]   ;;  %s1340_s2 = inlined_call_operand.vmem [shape: f32[1,16], index: 2, kind: input, shape index: {}]   ;;  %s1341_s3 = inlined_call_operand.vmem [shape: bf16[32,16], index: 3, kind: output, shape index: {0}]   ;;  %s1342_s4 = inlined_call_operand.vmem [shape: f32[2,1,16], index: 4, kind: output, shape index: {1}]   ;;  %s1343_s5 = inlined_call_operand.vmem [shape: f32[2,1,16], index: 5, kind: output, shape index: {2}]  }
   0x1   :  { %s1185_s20 = smov 0  }
   0x2 LB: > { %s35_s21 = sadd.s32 1, %s1144_s19  ;;  %p969_p0 = scmp.ge.s32.totalorder %s1148_s20, 1  ;;  %s1148_s20 = sphi %s1185_s20, %s16_s20   ;;  %s1144_s19 = sphi %s1183_s19, %s1345_s19   ;;  %s1140_s18 = sphi %s1181_s18, %s1344_s18  }
   0x3   : > { %p37_p1 = scmp.ge.s32.totalorder %s35_s21, 2  ;;  %p250_p2 = scmp.lt.s32.totalorder %s1148_s20, 3 }
   0x5   : > { %s1347_s21 = smov (%p37_p1, %s35_s21), 0  ;;  %p251_p3 = pnand %p969_p0, %p250_p2 }
   0x6   : > { %s970_s8 = sshll.u32 (!%p251_p3), %s1140_s18, 1  ;;  %p342_p5 = scmp.lt.s32.totalorder (!%p251_p3), %s1140_s18, 1 }
   0x7   : > { %254 = sbr.rel (%p251_p3) target bundleno = 278 (0x116), region = 32  ;;  %p311_p4 = scmp.lt.s32.totalorder (!%p251_p3), %s970_s8, 3 }
   0xc   : > { %v1088_v0 = vld [vmem:[%s1339_s1 + $0x78] sm:$0xff]   ;;  %v1092_v4 = vld [vmem:[%s1339_s1 + $0x70] sm:$0xff]   ;;  %v1096_v8 = vld [vmem:[%s1339_s1 + $0x68] sm:$0xff]   ;;  %s1349_s8 = smov (!%p311_p4, %s970_s8), 3  ;;  %vm359_vm0 = vcmask 130048   ;;  %v1150_v36 = vmov 0.0  }
   0xd   : > { %v1089_v1 = vld [vmem:[%s1339_s1 + $0xf8] sm:$0xff]   ;;  %1019 = vmatprep.subr.bf16.mxu0 %v1088_v0  ;;  %v1093_v5 = vld [vmem:[%s1339_s1 + $0xf0] sm:$0xff]   ;;  %v1097_v9 = vld [vmem:[%s1339_s1 + $0xe8] sm:$0xff]   ;;  %s1016_s11 = sshll.u32 %s1349_s8, 4  ;;  %360 = vst.msk [vmem:[#allocation2] sm:$0xff] %vm359_vm0, %v1150_v36  ;;  %s974_s6 = sshll.u32 %s1349_s8, 2 }
   0xe   : > { %v1090_v2 = vld [vmem:[%s1339_s1 + $0x38] sm:$0xff]   ;;  %1041 = vmatprep.subr.bf16.mxu1 %v1089_v1  ;;  %v1094_v6 = vld [vmem:[%s1339_s1 + $0x30] sm:$0xff]   ;;  %v1098_v10 = vld [vmem:[%s1339_s1 + $0x28] sm:$0xff]   ;;  %s318_s24 = scalar_lea.vmem %s1338_s0, %s1016_s11  ;;  %361 = vst.msk [vmem:[#allocation2 + $0x8] sm:$0xff] %vm359_vm0, %v1150_v36  ;;  %s340_s10 = scalar_lea.vmem %s1341_s3, %s974_s6  ;;  %vm776_vm1 = vcmask 125952   ;;  %vm745_vm2 = vcmask 122880  }
   0xf   : > { %v1091_v3 = vld [vmem:[%s1339_s1 + $0xb8] sm:$0xff]   ;;  %1020 = vmatpush3.bf16.msra.mxu0 %v1090_v2  ;;  %v1095_v7 = vld [vmem:[%s1339_s1 + $0xb0] sm:$0xff]   ;;  %v1099_v11 = vld [vmem:[%s1339_s1 + $0xa8] sm:$0xff]   ;;  %s1351_s18 = smov (!%p342_p5, %s1140_s18), 1 }
  0x10   : > { %1042 = vmatpush3.bf16.msra.mxu1 %v1091_v3  ;;  %1021 = vmatprep.subr.bf16.mxu0 %v1092_v4  ;;  %v1100_v12 = vld [vmem:[%s1339_s1 + $0x60] sm:$0xff]   ;;  %v1104_v16 = vld [vmem:[%s1339_s1 + $0x58] sm:$0xff]   ;;  %v1108_v20 = vld [vmem:[%s1339_s1 + $0x50] sm:$0xff]   ;;  %s347_s12 = scalar_lea.vmem %s1342_s4, %s1351_s18  ;;  %s353_s15 = scalar_lea.vmem %s1343_s5, %s1351_s18 }
  0x11   : > { %1043 = vmatprep.subr.bf16.mxu1 %v1093_v5  ;;  %v1101_v13 = vld [vmem:[%s1339_s1 + $0xe0] sm:$0xff]   ;;  %v1105_v17 = vld [vmem:[%s1339_s1 + $0xd8] sm:$0xff]   ;;  %v1109_v21 = vld [vmem:[%s1339_s1 + $0xd0] sm:$0xff]  }
  0x12   : > { %v1102_v14 = vld [vmem:[%s1339_s1 + $0x20] sm:$0xff]   ;;  %v1106_v18 = vld [vmem:[%s1339_s1 + $0x18] sm:$0xff]   ;;  %v1110_v22 = vld [vmem:[%s1339_s1 + $0x10] sm:$0xff]  }
  0x13   : > { %1022 = vmatpush3.bf16.msra.mxu0 %v1094_v6  ;;  %v1103_v15 = vld [vmem:[%s1339_s1 + $0xa0] sm:$0xff]   ;;  %v1107_v19 = vld [vmem:[%s1339_s1 + $0x98] sm:$0xff]   ;;  %v1111_v23 = vld [vmem:[%s1339_s1 + $0x90] sm:$0xff]  }
  0x14   : > { %1044 = vmatpush3.bf16.msra.mxu1 %v1095_v7  ;;  %1023 = vmatprep.subr.bf16.mxu0 %v1096_v8  ;;  %v1112_v24 = vld [vmem:[%s1339_s1 + $0x48] sm:$0xff]   ;;  %v1116_v28 = vld [vmem:[%s1339_s1 + $0x40] sm:$0xff]  }
  0x15   : > { %1045 = vmatprep.subr.bf16.mxu1 %v1097_v9  ;;  %v1113_v25 = vld [vmem:[%s1339_s1 + $0xc8] sm:$0xff]   ;;  %v1117_v29 = vld [vmem:[%s1339_s1 + $0xc0] sm:$0xff]  }
  0x16   : > { %v1114_v26 = vld [vmem:[%s1339_s1 + $0x8] sm:$0xff]   ;;  %v1118_v30 = vld [vmem:[%s1339_s1] sm:$0xff]  }
  0x17   : > { %1024 = vmatpush3.bf16.msra.mxu0 %v1098_v10  ;;  %v1115_v27 = vld [vmem:[%s1339_s1 + $0x88] sm:$0xff]   ;;  %v1119_v31 = vld [vmem:[%s1339_s1 + $0x80] sm:$0xff]  }
  0x18   : > { %1046 = vmatpush3.bf16.msra.mxu1 %v1099_v11  ;;  %1025 = vmatprep.subr.bf16.mxu0 %v1100_v12  ;;  %v1120_v32 = vld [vmem:[%s318_s24] ss:$16 sps:$4 sm:$0xff]   ;;  %v1122_v33 = vld [vmem:[%s318_s24 + $0x4] ss:$16 sps:$4 sm:$0xff]   ;;  %v1123_v34 = vld [vmem:[%s318_s24 + $0x8] ss:$16 sps:$4 sm:$0xff]  }
  0x19   : > { %1047 = vmatprep.subr.bf16.mxu1 %v1101_v13  ;;  %v1125_v35 = vld [vmem:[%s318_s24 + $0xc] ss:$16 sps:$4 sm:$0xff]   ;;  %676 = vmatprep.mubr.bf16.mxu0 %v1122_v33  ;;  %v362_v44 = vld [vmem:[#allocation2] sm:$0xff] }
  0x1a   : > { %717 = vmatprep.mubr.bf16.mxu1 %v1125_v35  ;;  %v363_v52 = vld [vmem:[#allocation2 + $0x8] sm:$0xff]  ;;  %v1011_v55 = vld [vmem:[%s1340_s2] ss:$0 sm:$0xff] }
  0x1b   : > { %1026 = vmatpush3.bf16.msra.mxu0 %v1102_v14 }
  0x1c   : > { %1048 = vmatpush3.bf16.msra.mxu1 %v1103_v15  ;;  %1027 = vmatprep.subr.bf16.mxu0 %v1104_v16 }
  0x1d   : > { %1049 = vmatprep.subr.bf16.mxu1 %v1105_v17 }
  0x1f   : > { %1028 = vmatpush3.bf16.msra.mxu0 %v1106_v18 }
  0x20   : > { %1050 = vmatpush3.bf16.msra.mxu1 %v1107_v19  ;;  %1029 = vmatprep.subr.bf16.mxu0 %v1108_v20 }
  0x21   : > { %1051 = vmatprep.subr.bf16.mxu1 %v1109_v21 }
  0x23   : > { %1030 = vmatpush3.bf16.msra.mxu0 %v1110_v22 }
  0x24   : > { %1052 = vmatpush3.bf16.msra.mxu1 %v1111_v23  ;;  %1031 = vmatprep.subr.bf16.mxu0 %v1112_v24 }
  0x25   : > { %1053 = vmatprep.subr.bf16.mxu1 %v1113_v25 }
  0x27   : > { %1032 = vmatpush3.bf16.msra.mxu0 %v1114_v26 }
  0x28   : > { %1054 = vmatpush3.bf16.msra.mxu1 %v1115_v27  ;;  %1033 = vmatprep.subr.bf16.mxu0 %v1116_v28 }
  0x29   : > { %1055 = vmatprep.subr.bf16.mxu1 %v1117_v29 }
  0x2b   : > { %1034 = vmatpush3.bf16.msra.mxu0 %v1118_v30 }
  0x2c   : > { %1056 = vmatpush3.bf16.msra.mxu1 %v1119_v31 }
  0x2e   : > { %677 = vmatmul.mubr.bf16.vlgmr.msra.gmra.mxu0 %v1120_v32 }
  0x2f   : > { %718 = vmatmul.mubr.bf16.vlgmr.msra.gmra.mxu1 %v1123_v34 }
  0xee   : > { %v1035_v37 = vpop.f32.mrf.mxu0 }
  0xef   : > { %v1057_v38 = vpop.f32.mrf.mxu1 }
  0xf0   : > { %v1036_v39 = vpop.f32.mrf.mxu0 }
  0xf1   : > { %v1037_v40 = vadd.f32 %v1036_v39, %v1035_v37  ;;  %v1058_v41 = vpop.f32.mrf.mxu1 }
  0xf2   : > { %v1059_v42 = vadd.f32 %v1058_v41, %v1057_v38  ;;  %v1038_v43 = vpop.f32.mrf.mxu0 }
  0xf3   : > { %v1060_v45 = vpop.f32.mrf.mxu1 }
  0xf4   : > { %v720_v46 = vadd.f32 %v1059_v42, %v1037_v40  ;;  %v1039_v47 = vpop.f32.mrf.mxu0 }
  0xf5   : > { %v1040_v48 = vadd.f32 %v1039_v47, %v1038_v43  ;;  %v1061_v49 = vpop.f32.mrf.mxu1 }
  0xf6   : > { %v726_v50 = vadd.f32 %v720_v46, %v362_v44  ;;  %v1062_v51 = vadd.f32 %v1061_v49, %v1060_v45 }
  0xf8   : > { %729 = vst.msk [vmem:[#allocation2] sm:$0xff] %vm359_vm0, %v726_v50  ;;  %v723_v53 = vadd.f32 %v1062_v51, %v1040_v48 }
  0xfa   : > { %v727_v54 = vadd.f32 %v723_v53, %v363_v52 }
  0xfc   : > { %730 = vst.msk [vmem:[#allocation2 + $0x8] sm:$0xff] %vm359_vm0, %v727_v54 }
  0xff   : > { %v734_v56 = vld [vmem:[#allocation2] sm:$0xff] }
 0x100   : > { %v766_v57 = vadd.f32 %v1011_v55, %v734_v56  ;;  %v747_v58 = vmul.f32 %v734_v56, %v734_v56  ;;  %v736_v61 = vsel %vm359_vm0, %v734_v56, 0.0 }
 0x102   : > { %v1017_v59 = vpack.c.bf16 %v766_v57, %v766_v57  ;;  %v749_v2 = vsel %vm359_vm0, %v747_v58, 0.0 }
 0x103   : > { %v735_v60 = vld [vmem:[#allocation2 + $0x8] sm:$0xff] }
 0x104   : > { %777 = vst.msk [vmem:[%s340_s10] sm:$0xf] %vm776_vm1, %v1017_v59  ;;  %v737_v62 = vsel %vm359_vm0, %v735_v60, 0.0  ;;  %v748_v63 = vmul.f32 %v735_v60, %v735_v60  ;;  %v767_v0 = vadd.f32 %v1011_v55, %v735_v60 }
 0x105   : > { %v738_v1 = vadd.f32 %v737_v62, %v736_v61 }
 0x106   : > { %v750_v3 = vsel %vm359_vm0, %v748_v63, 0.0  ;;  %v1018_v4 = vpack.c.bf16 %v767_v0, %v767_v0 }
 0x107   : > { %v739_v5 = vrot.slane %v738_v1, 4  ;;  %v751_v6 = vadd.f32 %v750_v3, %v749_v2 }
 0x108   : > { %778 = vst.msk [vmem:[%s340_s10 + $0x4] sm:$0xf] %vm776_vm1, %v1018_v4 }
 0x109   : > { %v740_v7 = vadd.f32 %v739_v5, %v738_v1  ;;  %v752_v8 = vrot.slane %v751_v6, 4 }
 0x10b   : > { %v741_v9 = vrot.slane %v740_v7, 2  ;;  %v753_v10 = vadd.f32 %v752_v8, %v751_v6 }
 0x10d   : > { %v742_v11 = vadd.f32 %v741_v9, %v740_v7  ;;  %v754_v12 = vrot.slane %v753_v10, 2 }
 0x10f   : > { %v743_v13 = vrot.slane %v742_v11, 1  ;;  %v755_v14 = vadd.f32 %v754_v12, %v753_v10 }
 0x111   : > { %v744_v15 = vadd.f32 %v743_v13, %v742_v11  ;;  %v756_v16 = vrot.slane %v755_v14, 1 }
 0x113   : > { %746 = vst.msk [vmem:[%s347_s12] sm:$0x1] %vm745_vm2, %v744_v15  ;;  %v757_v17 = vadd.f32 %v756_v16, %v755_v14 }
 0x115   : > { %758 = vst.msk [vmem:[%s353_s15] sm:$0x1] %vm745_vm2, %v757_v17 }
 0x116 PF: > { %s16_s20 = sadd.s32 1, %s1148_s20   ;;  %s1344_s18 = smov %s1144_s19 }
 0x117   : > { %p13_p6 = scmp.ge.s32.totalorder %s16_s20, 4   ;;  %s1345_s19 = smov %s1347_s21 }
 0x119   :  { %15 = sbr.rel (!%p13_p6) target bundleno = 2 (0x2), region = 100 }

// kernel: nlayer_3d_discriminator_forward.12
= control target key start
LH: loop header
LB: loop body
LE: loop exit
PB: predicated region body
PF: predicated region fallthrough
CT: control target
= control target key end

     0   :  { %vm36_vm1 = vcmask 257024   ;;  %s76_s0 = inlined_call_operand.vmem [shape: bf16[8,32], index: 0, kind: input, shape index: {}]   ;;  %s77_s1 = inlined_call_operand.vmem [shape: f32[1,32], index: 1, kind: input, shape index: {}]   ;;  %s78_s2 = inlined_call_operand.vmem [shape: f32[1,32], index: 2, kind: input, shape index: {}]   ;;  %s79_s3 = inlined_call_operand.vmem [shape: bf16[8,32], index: 3, kind: output, shape index: {}]  }
   0x1   :  { %v14_v0 = vld [vmem:[%s76_s0] sm:$0xf] }
   0x2   :  { %v42_v1 = vld [vmem:[%s77_s1] ss:$0 sm:$0xff]  ;;  %v15_v2 = vunpack.c.l.bf16 %v14_v0 }
   0x3   :  { %v43_v3 = vld [vmem:[%s78_s2] ss:$0 sm:$0xff] }
   0x4   :  { %v23_v4 = vmul.f32 %v42_v1, %v15_v2 }
   0x6   :  { %v31_v5 = vadd.f32 %v43_v3, %v23_v4 }
   0x8   :  { %vm32_vm0 = vcmp.ge.f32.partialorder %v31_v5, 0.0  ;;  %v33_v6 = vmul.f32 0.2, %v31_v5 }
   0xa   :  { %v34_v7 = vsel %vm32_vm0, %v31_v5, %v33_v6 }
   0xb   :  { %v35_v8 = vpack.c.bf16 %v34_v7, %v34_v7 }
   0xd   :  { %37 = vst.msk [vmem:[%s79_s3] sm:$0xf] %vm36_vm1, %v35_v8 }

// kernel: nlayer_3d_discriminator_forward.11
= control target key start
LH: loop header
LB: loop body
LE: loop exit
PB: predicated region body
PF: predicated region fallthrough
CT: control target
= control target key end

     0   :  { %vm22_vm0 = vcmask 261120   ;;  %vm763_vm1 = vcmask 257024   ;;  %vm743_vm2 = vcmask 253952   ;;  %s1262_s1 = inlined_call_operand.vmem [shape: bf16[1024,32], index: 1, kind: input, shape index: {}]   ;;  %s1263_s0 = inlined_call_operand.vmem [shape: bf16[8,1024], index: 0, kind: input, shape index: {}]   ;;  %s1264_s2 = inlined_call_operand.vmem [shape: f32[1,32], index: 2, kind: input, shape index: {}]   ;;  %s1265_s3 = inlined_call_operand.vmem [shape: bf16[8,32], index: 3, kind: output, shape index: {0}]   ;;  %s1266_s4 = inlined_call_operand.vmem [shape: f32[1,1,32], index: 4, kind: output, shape index: {1}]   ;;  %s1267_s5 = inlined_call_operand.vmem [shape: f32[1,1,32], index: 5, kind: output, shape index: {2}]  }
   0x1   :  { %v939_v0 = vld [vmem:[%s1262_s1 + $0x78] sm:$0xff]   ;;  %v943_v4 = vld [vmem:[%s1262_s1 + $0x70] sm:$0xff]   ;;  %v947_v8 = vld [vmem:[%s1262_s1 + $0x68] sm:$0xff]  }
   0x2   :  { %v940_v1 = vld [vmem:[%s1262_s1 + $0xf8] sm:$0xff]   ;;  %850 = vmatprep.subr.bf16.mxu0 %v939_v0  ;;  %v944_v5 = vld [vmem:[%s1262_s1 + $0xf0] sm:$0xff]   ;;  %v948_v9 = vld [vmem:[%s1262_s1 + $0xe8] sm:$0xff]  }
   0x3   :  { %v941_v2 = vld [vmem:[%s1262_s1 + $0x38] sm:$0xff]   ;;  %872 = vmatprep.subr.bf16.mxu1 %v940_v1  ;;  %v945_v6 = vld [vmem:[%s1262_s1 + $0x30] sm:$0xff]   ;;  %v949_v10 = vld [vmem:[%s1262_s1 + $0x28] sm:$0xff]  }
   0x4   :  { %v942_v3 = vld [vmem:[%s1262_s1 + $0xb8] sm:$0xff]   ;;  %851 = vmatpush3.bf16.msra.mxu0 %v941_v2  ;;  %v946_v7 = vld [vmem:[%s1262_s1 + $0xb0] sm:$0xff]   ;;  %v950_v11 = vld [vmem:[%s1262_s1 + $0xa8] sm:$0xff]  }
   0x5   :  { %873 = vmatpush3.bf16.msra.mxu1 %v942_v3  ;;  %852 = vmatprep.subr.bf16.mxu0 %v943_v4  ;;  %v951_v12 = vld [vmem:[%s1262_s1 + $0x60] sm:$0xff]   ;;  %v955_v16 = vld [vmem:[%s1262_s1 + $0x58] sm:$0xff]   ;;  %v959_v20 = vld [vmem:[%s1262_s1 + $0x50] sm:$0xff]  }
   0x6   :  { %874 = vmatprep.subr.bf16.mxu1 %v944_v5  ;;  %v952_v13 = vld [vmem:[%s1262_s1 + $0xe0] sm:$0xff]   ;;  %v956_v17 = vld [vmem:[%s1262_s1 + $0xd8] sm:$0xff]   ;;  %v960_v21 = vld [vmem:[%s1262_s1 + $0xd0] sm:$0xff]  }
   0x7   :  { %v953_v14 = vld [vmem:[%s1262_s1 + $0x20] sm:$0xff]   ;;  %v957_v18 = vld [vmem:[%s1262_s1 + $0x18] sm:$0xff]   ;;  %v961_v22 = vld [vmem:[%s1262_s1 + $0x10] sm:$0xff]  }
   0x8   :  { %853 = vmatpush3.bf16.msra.mxu0 %v945_v6  ;;  %v954_v15 = vld [vmem:[%s1262_s1 + $0xa0] sm:$0xff]   ;;  %v958_v19 = vld [vmem:[%s1262_s1 + $0x98] sm:$0xff]   ;;  %v962_v23 = vld [vmem:[%s1262_s1 + $0x90] sm:$0xff]  }
   0x9   :  { %875 = vmatpush3.bf16.msra.mxu1 %v946_v7  ;;  %854 = vmatprep.subr.bf16.mxu0 %v947_v8  ;;  %v963_v24 = vld [vmem:[%s1262_s1 + $0x48] sm:$0xff]   ;;  %v967_v28 = vld [vmem:[%s1262_s1 + $0x40] sm:$0xff]   ;;  %v975_v38 = vld [vmem:[%s1262_s1 + $0x178] sm:$0xff]  }
   0xa   :  { %876 = vmatprep.subr.bf16.mxu1 %v948_v9  ;;  %v964_v25 = vld [vmem:[%s1262_s1 + $0xc8] sm:$0xff]   ;;  %v968_v29 = vld [vmem:[%s1262_s1 + $0xc0] sm:$0xff]   ;;  %v976_v39 = vld [vmem:[%s1262_s1 + $0x1f8] sm:$0xff]  }
   0xb   :  { %v965_v26 = vld [vmem:[%s1262_s1 + $0x8] sm:$0xff]   ;;  %v969_v30 = vld [vmem:[%s1262_s1] sm:$0xff]   ;;  %v977_v40 = vld [vmem:[%s1262_s1 + $0x138] sm:$0xff]  }
   0xc   :  { %855 = vmatpush3.bf16.msra.mxu0 %v949_v10  ;;  %v966_v27 = vld [vmem:[%s1262_s1 + $0x88] sm:$0xff]   ;;  %v970_v31 = vld [vmem:[%s1262_s1 + $0x80] sm:$0xff]   ;;  %v978_v41 = vld [vmem:[%s1262_s1 + $0x1b8] sm:$0xff]  }
   0xd   :  { %877 = vmatpush3.bf16.msra.mxu1 %v950_v11  ;;  %856 = vmatprep.subr.bf16.mxu0 %v951_v12  ;;  %v25_v32 = vld [vmem:[%s1263_s0] sm:$0xff]  ;;  %v26_v33 = vld [vmem:[%s1263_s0 + $0x8] sm:$0xff]  ;;  %v979_v42 = vld [vmem:[%s1262_s1 + $0x170] sm:$0xff]   ;;  %v1011_v12 = vmov 0.0  }
   0xe   :  { %878 = vmatprep.subr.bf16.mxu1 %v952_v13  ;;  %v777_v34 = vcombine.low %v25_v32, %v25_v32  ;;  %v778_v35 = vcombine.high %v25_v32, %v25_v32  ;;  %v779_v36 = vcombine.low %v26_v33, %v26_v33  ;;  %v780_v37 = vcombine.high %v26_v33, %v26_v33  ;;  %v980_v43 = vld [vmem:[%s1262_s1 + $0x1f0] sm:$0xff]   ;;  %v983_v46 = vld [vmem:[%s1262_s1 + $0x168] sm:$0xff]   ;;  %v987_v50 = vld [vmem:[%s1262_s1 + $0x160] sm:$0xff]  }
   0xf   :  { %v981_v44 = vld [vmem:[%s1262_s1 + $0x130] sm:$0xff]   ;;  %v984_v47 = vld [vmem:[%s1262_s1 + $0x1e8] sm:$0xff]   ;;  %v988_v51 = vld [vmem:[%s1262_s1 + $0x1e0] sm:$0xff]   ;;  %23 = vst.msk [vmem:[#allocation2] sm:$0xff] %vm22_vm0, %v1011_v12 }
  0x10   :  { %857 = vmatpush3.bf16.msra.mxu0 %v953_v14  ;;  %601 = vmatprep.mubr.bf16.mxu0 %v778_v35  ;;  %v982_v45 = vld [vmem:[%s1262_s1 + $0x1b0] sm:$0xff]   ;;  %v985_v48 = vld [vmem:[%s1262_s1 + $0x128] sm:$0xff]   ;;  %v989_v52 = vld [vmem:[%s1262_s1 + $0x120] sm:$0xff]  }
  0x11   :  { %879 = vmatpush3.bf16.msra.mxu1 %v954_v15  ;;  %858 = vmatprep.subr.bf16.mxu0 %v955_v16  ;;  %v986_v49 = vld [vmem:[%s1262_s1 + $0x1a8] sm:$0xff]   ;;  %v990_v53 = vld [vmem:[%s1262_s1 + $0x1a0] sm:$0xff]   ;;  %v991_v54 = vld [vmem:[%s1262_s1 + $0x158] sm:$0xff]  }
  0x12   :  { %880 = vmatprep.subr.bf16.mxu1 %v956_v17  ;;  %641 = vmatprep.mubr.bf16.mxu1 %v780_v37  ;;  %v992_v55 = vld [vmem:[%s1262_s1 + $0x1d8] sm:$0xff]   ;;  %v995_v58 = vld [vmem:[%s1262_s1 + $0x150] sm:$0xff]   ;;  %v999_v62 = vld [vmem:[%s1262_s1 + $0x148] sm:$0xff]  }
  0x13   :  { %v993_v56 = vld [vmem:[%s1262_s1 + $0x118] sm:$0xff]   ;;  %v996_v59 = vld [vmem:[%s1262_s1 + $0x1d0] sm:$0xff]   ;;  %v1000_v63 = vld [vmem:[%s1262_s1 + $0x1c8] sm:$0xff]  }
  0x14   :  { %859 = vmatpush3.bf16.msra.mxu0 %v957_v18  ;;  %v994_v57 = vld [vmem:[%s1262_s1 + $0x198] sm:$0xff]   ;;  %v997_v60 = vld [vmem:[%s1262_s1 + $0x110] sm:$0xff]   ;;  %v1001_v0 = vld [vmem:[%s1262_s1 + $0x108] sm:$0xff]  }
  0x15   :  { %881 = vmatpush3.bf16.msra.mxu1 %v958_v19  ;;  %860 = vmatprep.subr.bf16.mxu0 %v959_v20  ;;  %v998_v61 = vld [vmem:[%s1262_s1 + $0x190] sm:$0xff]   ;;  %v1002_v1 = vld [vmem:[%s1262_s1 + $0x188] sm:$0xff]   ;;  %v1003_v2 = vld [vmem:[%s1262_s1 + $0x140] sm:$0xff]  }
  0x16   :  { %882 = vmatprep.subr.bf16.mxu1 %v960_v21  ;;  %v1004_v3 = vld [vmem:[%s1262_s1 + $0x1c0] sm:$0xff]   ;;  %v27_v6 = vld [vmem:[%s1263_s0 + $0x10] sm:$0xff]  ;;  %v28_v9 = vld [vmem:[%s1263_s0 + $0x18] sm:$0xff] }
  0x17   :  { %v1005_v4 = vld [vmem:[%s1262_s1 + $0x100] sm:$0xff]   ;;  %v781_v7 = vcombine.low %v27_v6, %v27_v6  ;;  %v782_v8 = vcombine.high %v27_v6, %v27_v6  ;;  %v783_v10 = vcombine.low %v28_v9, %v28_v9  ;;  %v784_v11 = vcombine.high %v28_v9, %v28_v9 }
  0x18   :  { %861 = vmatpush3.bf16.msra.mxu0 %v961_v22  ;;  %v1006_v5 = vld [vmem:[%s1262_s1 + $0x180] sm:$0xff]  }
  0x19   :  { %883 = vmatpush3.bf16.msra.mxu1 %v962_v23  ;;  %862 = vmatprep.subr.bf16.mxu0 %v963_v24  ;;  %v24_v33 = vld [vmem:[#allocation2] sm:$0xff] }
  0x1a   :  { %884 = vmatprep.subr.bf16.mxu1 %v964_v25 }
  0x1c   :  { %863 = vmatpush3.bf16.msra.mxu0 %v965_v26 }
  0x1d   :  { %885 = vmatpush3.bf16.msra.mxu1 %v966_v27  ;;  %864 = vmatprep.subr.bf16.mxu0 %v967_v28 }
  0x1e   :  { %886 = vmatprep.subr.bf16.mxu1 %v968_v29 }
  0x20   :  { %865 = vmatpush3.bf16.msra.mxu0 %v969_v30 }
  0x21   :  { %887 = vmatpush3.bf16.msra.mxu1 %v970_v31  ;;  %894 = vmatprep.subr.bf16.mxu0 %v975_v38  ;;  %v849_v38 = vld [vmem:[%s1264_s2] ss:$0 sm:$0xff] }
  0x22   :  { %916 = vmatprep.subr.bf16.mxu1 %v976_v39 }
  0x23   :  { %602 = vmatmul.mubr.bf16.vlgmr.msra.gmra.mxu0 %v777_v34 }
  0x24   :  { %642 = vmatmul.mubr.bf16.vlgmr.msra.gmra.mxu1 %v779_v36  ;;  %895 = vmatpush3.bf16.msra.mxu0 %v977_v40 }
  0x25   :  { %917 = vmatpush3.bf16.msra.mxu1 %v978_v41  ;;  %896 = vmatprep.subr.bf16.mxu0 %v979_v42 }
  0x26   :  { %918 = vmatprep.subr.bf16.mxu1 %v980_v43  ;;  %681 = vmatprep.mubr.bf16.mxu0 %v782_v8 }
  0x27   :  { %721 = vmatprep.mubr.bf16.mxu1 %v784_v11 }
  0x28   :  { %897 = vmatpush3.bf16.msra.mxu0 %v981_v44 }
  0x29   :  { %919 = vmatpush3.bf16.msra.mxu1 %v982_v45  ;;  %898 = vmatprep.subr.bf16.mxu0 %v983_v46 }
  0x2a   :  { %920 = vmatprep.subr.bf16.mxu1 %v984_v47 }
  0x2c   :  { %899 = vmatpush3.bf16.msra.mxu0 %v985_v48 }
  0x2d   :  { %921 = vmatpush3.bf16.msra.mxu1 %v986_v49  ;;  %900 = vmatprep.subr.bf16.mxu0 %v987_v50 }
  0x2e   :  { %922 = vmatprep.subr.bf16.mxu1 %v988_v51 }
  0x30   :  { %901 = vmatpush3.bf16.msra.mxu0 %v989_v52 }
  0x31   :  { %923 = vmatpush3.bf16.msra.mxu1 %v990_v53  ;;  %902 = vmatprep.subr.bf16.mxu0 %v991_v54 }
  0x32   :  { %924 = vmatprep.subr.bf16.mxu1 %v992_v55 }
  0x34   :  { %903 = vmatpush3.bf16.msra.mxu0 %v993_v56 }
  0x35   :  { %925 = vmatpush3.bf16.msra.mxu1 %v994_v57  ;;  %904 = vmatprep.subr.bf16.mxu0 %v995_v58 }
  0x36   :  { %926 = vmatprep.subr.bf16.mxu1 %v996_v59 }
  0x38   :  { %905 = vmatpush3.bf16.msra.mxu0 %v997_v60 }
  0x39   :  { %927 = vmatpush3.bf16.msra.mxu1 %v998_v61  ;;  %906 = vmatprep.subr.bf16.mxu0 %v999_v62 }
  0x3a   :  { %928 = vmatprep.subr.bf16.mxu1 %v1000_v63 }
  0x3c   :  { %907 = vmatpush3.bf16.msra.mxu0 %v1001_v0 }
  0x3d   :  { %929 = vmatpush3.bf16.msra.mxu1 %v1002_v1  ;;  %908 = vmatprep.subr.bf16.mxu0 %v1003_v2 }
  0x3e   :  { %930 = vmatprep.subr.bf16.mxu1 %v1004_v3 }
  0x40   :  { %909 = vmatpush3.bf16.msra.mxu0 %v1005_v4 }
  0x41   :  { %931 = vmatpush3.bf16.msra.mxu1 %v1006_v5 }
  0x43   :  { %682 = vmatmul.mubr.bf16.vlgmr.msra.gmra.mxu0 %v781_v7 }
  0x44   :  { %722 = vmatmul.mubr.bf16.vlgmr.msra.gmra.mxu1 %v783_v10 }
  0xe3   :  { %v866_v13 = vpop.f32.mrf.mxu0 }
  0xe4   :  { %v888_v14 = vpop.f32.mrf.mxu1 }
  0xe5   :  { %v867_v15 = vpop.f32.mrf.mxu0 }
  0xe6   :  { %v889_v16 = vpop.f32.mrf.mxu1  ;;  %v868_v21 = vadd.f32 %v867_v15, %v866_v13 }
  0xe7   :  { %v869_v17 = vpop.f32.mrf.mxu0  ;;  %v890_v22 = vadd.f32 %v889_v16, %v888_v14 }
  0xe8   :  { %v891_v18 = vpop.f32.mrf.mxu1 }
  0xe9   :  { %v870_v19 = vpop.f32.mrf.mxu0  ;;  %v644_v27 = vadd.f32 %v890_v22, %v868_v21 }
  0xea   :  { %v892_v20 = vpop.f32.mrf.mxu1 }
 0x103   :  { %v910_v23 = vpop.f32.mrf.mxu0 }
 0x104   :  { %v932_v24 = vpop.f32.mrf.mxu1 }
 0x105   :  { %v911_v25 = vpop.f32.mrf.mxu0 }
 0x106   :  { %v933_v26 = vpop.f32.mrf.mxu1  ;;  %v912_v28 = vadd.f32 %v911_v25, %v910_v23 }
 0x107   :  { %v913_v29 = vpop.f32.mrf.mxu0  ;;  %v934_v32 = vadd.f32 %v933_v26, %v932_v24 }
 0x108   :  { %v935_v30 = vpop.f32.mrf.mxu1  ;;  %v684_v31 = vadd.f32 %v912_v28, %v644_v27 }
 0x109   :  { %v914_v34 = vpop.f32.mrf.mxu0 }
 0x10a   :  { %v936_v35 = vpop.f32.mrf.mxu1  ;;  %v724_v36 = vadd.f32 %v934_v32, %v684_v31 }
 0x10c   :  { %v729_v37 = vadd.f32 %v724_v36, %v24_v33 }
 0x10e   :  { %731 = vst.msk [vmem:[#allocation2] sm:$0xff] %vm22_vm0, %v729_v37 }
 0x115   :  { %v735_v39 = vld [vmem:[#allocation2] sm:$0xff] }
 0x116   :  { %v736_v40 = vsel %vm22_vm0, %v735_v39, 0.0  ;;  %v745_v41 = vmul.f32 %v735_v39, %v735_v39  ;;  %v761_v42 = vadd.f32 %v849_v38, %v735_v39 }
 0x117   :  { %v737_v43 = vrot.slane %v736_v40, 4 }
 0x118   :  { %v746_v44 = vsel %vm22_vm0, %v745_v41, 0.0  ;;  %v762_v45 = vpack.c.bf16 %v761_v42, %v761_v42 }
 0x119   :  { %v738_v46 = vadd.f32 %v737_v43, %v736_v40  ;;  %v747_v47 = vrot.slane %v746_v44, 4 }
 0x11a   :  { %764 = vst.msk [vmem:[%s1265_s3] sm:$0xf] %vm763_vm1, %v762_v45 }
 0x11b   :  { %v739_v48 = vrot.slane %v738_v46, 2  ;;  %v748_v49 = vadd.f32 %v747_v47, %v746_v44 }
 0x11d   :  { %v740_v50 = vadd.f32 %v739_v48, %v738_v46  ;;  %v749_v51 = vrot.slane %v748_v49, 2 }
 0x11f   :  { %v741_v52 = vrot.slane %v740_v50, 1  ;;  %v750_v53 = vadd.f32 %v749_v51, %v748_v49 }
 0x121   :  { %v742_v54 = vadd.f32 %v741_v52, %v740_v50  ;;  %v751_v55 = vrot.slane %v750_v53, 1 }
 0x123   :  { %744 = vst.msk [vmem:[%s1266_s4] sm:$0x1] %vm743_vm2, %v742_v54  ;;  %v752_v56 = vadd.f32 %v751_v55, %v750_v53 }
 0x125   :  { %753 = vst.msk [vmem:[%s1267_s5] sm:$0x1] %vm743_vm2, %v752_v56 }

// kernel: nlayer_3d_discriminator_forward.14
= control target key start
LH: loop header
LB: loop body
LE: loop exit
PB: predicated region body
PF: predicated region fallthrough
CT: control target
= control target key end

     0   :  { %s326_s12 = smov 0   ;;  %s349_s0 = inlined_call_operand.vmem [shape: bf16[32,64], index: 0, kind: input, shape index: {}]   ;;  %s350_s1 = inlined_call_operand.vmem [shape: f32[1,64], index: 1, kind: input, shape index: {}]   ;;  %s351_s2 = inlined_call_operand.vmem [shape: f32[1,64], index: 2, kind: input, shape index: {}]   ;;  %s352_s3 = inlined_call_operand.vmem [shape: bf16[32,64], index: 3, kind: output, shape index: {}]  }
   0x1 LB: > { %s269_s13 = sadd.s32 4294967295, %s304_s12   ;;  %p273_p0 = scmp.ge.s32.totalorder %s304_s12, 1  ;;  %s304_s12 = sphi %s326_s12, %s13_s12  }
   0x2   : > { %p138_p1 = scmp.lt.s32.totalorder %s304_s12, 3 }
   0x4   : > { %p139_p2 = pnand %p273_p0, %p138_p1 }
   0x5   : > { %s274_s14 = sshll.u32 (!%p139_p2), %s269_s13, 1 }
   0x6   : > { %142 = sbr.rel (%p139_p2) target bundleno = 27 (0x1b), region = 32  ;;  %p163_p3 = scmp.lt.s32.totalorder (!%p139_p2), %s274_s14, 3 }
   0xb   : > { %s354_s14 = smov (!%p163_p3, %s274_s14), 3  ;;  %v278_v1 = vld [vmem:[%s350_s1] ss:$0 sm:$0xff]  ;;  %vm210_vm2 = vcmask 519168  }
   0xc   : > { %s275_s15 = sshll.u32 %s354_s14, 2  ;;  %v279_v4 = vld [vmem:[%s351_s2] ss:$0 sm:$0xff] }
   0xd   : > { %s166_s18 = scalar_lea.vmem %s349_s0, %s275_s15  ;;  %s172_s25 = scalar_lea.vmem %s352_s3, %s275_s15 }
   0xe   : > { %v287_v0 = vld [vmem:[%s166_s18] sm:$0xff]  }
   0xf   : > { %v288_v2 = vunpack.c.l.bf16 %v287_v0  ;;  %v289_v3 = vunpack.c.h.bf16 %v287_v0 }
  0x11   : > { %v185_v5 = vmul.f32 %v288_v2, %v278_v1  ;;  %v186_v6 = vmul.f32 %v289_v3, %v278_v1 }
  0x13   : > { %v194_v7 = vadd.f32 %v279_v4, %v185_v5  ;;  %v195_v8 = vadd.f32 %v279_v4, %v186_v6 }
  0x15   : > { %vm196_vm0 = vcmp.ge.f32.partialorder %v194_v7, 0.0  ;;  %v198_v9 = vmul.f32 0.2, %v194_v7  ;;  %vm197_vm1 = vcmp.ge.f32.partialorder %v195_v8, 0.0  ;;  %v199_v10 = vmul.f32 0.2, %v195_v8 }
  0x17   : > { %v200_v11 = vsel %vm196_vm0, %v194_v7, %v198_v9  ;;  %v201_v12 = vsel %vm197_vm1, %v195_v8, %v199_v10 }
  0x18   : > { %v284_v13 = vpack.c.bf16 %v200_v11, %v200_v11  ;;  %v285_v14 = vpack.c.bf16 %v201_v12, %v201_v12 }
  0x1a   : > { %211 = vst.msk [vmem:[%s172_s25] sm:$0xf] %vm210_vm2, %v284_v13  ;;  %212 = vst.msk [vmem:[%s172_s25 + $0x4] sm:$0xf] %vm210_vm2, %v285_v14 }
  0x1b PF: > { %s13_s12 = sadd.s32 1, %s304_s12  }
  0x1c   : > { %p10_p4 = scmp.ge.s32.totalorder %s13_s12, 4  }
  0x1e   :  { %12 = sbr.rel (!%p10_p4) target bundleno = 1 (0x1), region = 62 }

// kernel: nlayer_3d_discriminator_forward.13
= control target key start
LH: loop header
LB: loop body
LE: loop exit
PB: predicated region body
PF: predicated region fallthrough
CT: control target
= control target key end

     0   :  { %s1743_s18 = smov 0   ;;  %s1745_s19 = smov 0   ;;  %s1948_s0 = inlined_call_operand.vmem [shape: bf16[32,2048], index: 0, kind: input, shape index: {}]   ;;  %s1949_s1 = inlined_call_operand.vmem [shape: bf16[2048,64], index: 1, kind: input, shape index: {}]   ;;  %s1950_s2 = inlined_call_operand.vmem [shape: f32[1,64], index: 2, kind: input, shape index: {}]   ;;  %s1951_s3 = inlined_call_operand.vmem [shape: bf16[32,64], index: 3, kind: output, shape index: {0}]   ;;  %s1952_s4 = inlined_call_operand.vmem [shape: f32[2,1,64], index: 4, kind: output, shape index: {1}]   ;;  %s1953_s5 = inlined_call_operand.vmem [shape: f32[2,1,64], index: 5, kind: output, shape index: {2}]  }
   0x1   :  { %s1747_s20 = smov 0   ;;  %s1749_s21 = smov 0  }
   0x2   :  { %s1751_s22 = smov 0   ;;  %s1753_s23 = smov 0  }
   0x3   :  { %s1755_s24 = smov 0  }
   0x4 LB: > { %s28_s25 = sadd.s32 1, %s1702_s22  ;;  %s35_s26 = sadd.s32 1, %s1706_s23  ;;  %s1710_s24 = sphi %s1755_s24, %s16_s24   ;;  %s1706_s23 = sphi %s1753_s23, %s1959_s23   ;;  %s1702_s22 = sphi %s1751_s22, %s1958_s22   ;;  %s1698_s21 = sphi %s1749_s21, %s1957_s21   ;;  %s1694_s20 = sphi %s1747_s20, %s1956_s20   ;;  %s1690_s19 = sphi %s1745_s19, %s1955_s19   ;;  %s1686_s18 = sphi %s1743_s18, %s1954_s18  }
   0x5   : > { %p29_p0 = scmp.ge.s32.totalorder %s28_s25, 2  ;;  %p51_p1 = scmp.ne.s32.totalorder %s1690_s19, %s1686_s18 }
   0x6   : > { %p52_p2 = scmp.eq.s32.totalorder %s1710_s24, 0  ;;  %s44_s30 = sadd.s32 1, %s1690_s19 }
   0x7   : > { %s1961_s25 = smov (%p29_p0, %s28_s25), 0  ;;  %s1963_s26 = smov (!%p29_p0, %s35_s26), %s1706_s23 }
   0x8   : > { %p53_p3 = por %p52_p2, %p51_p1  ;;  %p37_p4 = scmp.ge.s32.totalorder %s1963_s26, 2 }
   0x9   : > { %s40_s27 = ssub.s32 %s1702_s22, %s1961_s25  ;;  %p1353_p6 = scmp.ge.s32.totalorder %s1710_s24, 4 }
   0xa   : > { %s1965_s26 = smov (%p37_p4, %s1963_s26), 0 }
   0xb   : > { %s39_s28 = ssub.s32 %s1706_s23, %s1965_s26  ;;  %221 = sbr.rel (%p1353_p6) target bundleno = 27 (0x1b), region = 20 }
   0xc   : > { %s41_s29 = sor.u32 %s40_s27, %s39_s28 }
   0xd   : > { %p42_p5 = scmp.eq.s32.totalorder %s41_s29, 0 }
   0xf   : > { %s1794_s6 = scalar_select %p42_p5, %s1690_s19, %s44_s30  }
  0x10   : > { %224 = sbr.rel (!%p53_p3) target bundleno = 27 (0x1b), region = 24  ;;  %s226_s7 = sand.u32 (%p53_p3), 1, %s1690_s19  }
  0x11   : > { %s1356_s8 = sshll.u32 (%p53_p3), %s1702_s22, 3  ;;  %s1354_s9 = sshll.u32 (%p53_p3), %s226_s7, 6 }
  0x12   : > { %s1444_s10 = sshll.u32 (%p53_p3), %s1706_s23, 5  ;;  %s228_s16 = scalar_lea.vmem (%p53_p3), [#allocation3], %s1354_s9 }
  0x13   : > { %s232_s11 = sadd.s32 (%p53_p3), %s1444_s10, %s1356_s8 }
  0x14   : > { %s1358_s12 = sshll.u32 (%p53_p3), %s232_s11, 2 }
  0x15   : > { %s234_s15 = scalar_lea.vmem %s1948_s0, %s1358_s12 }
  0x16   : > { %v247_v0 = vld [vmem:[%s234_s15] sm:$0xff]  ;;  %v249_v1 = vld [vmem:[%s234_s15 + $0x8] sm:$0xff]  ;;  %v251_v2 = vld [vmem:[%s234_s15 + $0x10] sm:$0xff] }
  0x17   : > { %248 = vst [vmem:[%s228_s16] sm:$0xff] %v247_v0  ;;  %250 = vst [vmem:[%s228_s16 + $0x8] sm:$0xff] %v249_v1  ;;  %v253_v3 = vld [vmem:[%s234_s15 + $0x18] sm:$0xff]  ;;  %v255_v4 = vld [vmem:[%s234_s15 + $0x40] sm:$0xff] }
  0x18   : > { %252 = vst [vmem:[%s228_s16 + $0x10] sm:$0xff] %v251_v2  ;;  %v257_v5 = vld [vmem:[%s234_s15 + $0x48] sm:$0xff]  ;;  %254 = vst [vmem:[%s228_s16 + $0x18] sm:$0xff] %v253_v3  ;;  %v259_v6 = vld [vmem:[%s234_s15 + $0x50] sm:$0xff] }
  0x19   : > { %256 = vst [vmem:[%s228_s16 + $0x20] sm:$0xff] %v255_v4  ;;  %258 = vst [vmem:[%s228_s16 + $0x28] sm:$0xff] %v257_v5  ;;  %v261_v7 = vld [vmem:[%s234_s15 + $0x58] sm:$0xff] }
  0x1a   : > { %260 = vst [vmem:[%s228_s16 + $0x30] sm:$0xff] %v259_v6  ;;  %262 = vst [vmem:[%s228_s16 + $0x38] sm:$0xff] %v261_v7 }
  0x1b PF: > { %p1359_p7 = scmp.ge.s32.totalorder %s1710_s24, 1  ;;  %p279_p8 = scmp.lt.s32.totalorder %s1710_s24, 5 }
  0x1d   : > { %p280_p9 = pnand %p1359_p7, %p279_p8 }
  0x1e   : > { %s286_s17 = sand.u32 (!%p280_p9), 1, %s1686_s18   ;;  %s1361_s27 = sshll.u32 (!%p280_p9), %s1694_s20, 7 }
  0x1f   : > { %283 = sbr.rel (%p280_p9) target bundleno = 347 (0x15b), region = 51  ;;  %s1360_s28 = sshll.u32 (!%p280_p9), %s286_s17, 6 }
  0x20   : > { %p342_p10 = scmp.lt.s32.totalorder (!%p280_p9), %s1361_s27, 255  ;;  %s1363_s29 = sshll.u32 (!%p280_p9), %s1698_s21, 1 }
  0x21   : > { %p354_p11 = scmp.lt.s32.totalorder (!%p280_p9), %s1363_s29, 3  ;;  %p362_p12 = scmp.lt.s32.totalorder (!%p280_p9), %s1698_s21, 1 }
  0x22   : > { %p1365_p13 = scmp.ne.s32.totalorder (!%p280_p9), %s1694_s20, 0 }
  0x24   : > { %s1967_s27 = smov (!%p342_p10, %s1361_s27), 255  ;;  %s1969_s29 = smov (!%p354_p11, %s1363_s29), 3 }
  0x25   : > { %s1362_s30 = sshll.u32 %s1967_s27, 2  ;;  %s1971_s21 = smov (!%p362_p12, %s1698_s21), 1 }
  0x26   : > { %s1812_s9 = scalar_lea.vmem %s1949_s1, %s1362_s30  ;;  %s1364_s10 = sshll.u32 %s1969_s29, 2 }
  0x27   : > { %s1820_s12 = scalar_lea.vmem %s1951_s3, %s1364_s10  ;;  %s367_s15 = scalar_lea.vmem %s1952_s4, %s1971_s21 }
  0x28   : > { %s373_s27 = scalar_lea.vmem %s1953_s5, %s1971_s21  ;;  %s1830_s30 = scalar_lea.vmem [#allocation3], %s1360_s28 }
  0x29   : > { %378 = sbr.rel (%p1365_p13) target bundleno = 48 (0x30), region = 59 }
  0x2e   : > { %vm379_vm0 = vcmask 523264   ;;  %v1712_v8 = vmov 0.0  }
  0x2f   : > { %380 = vst.msk [vmem:[#allocation2] sm:$0xff] %vm379_vm0, %v1712_v8  ;;  %381 = vst.msk [vmem:[#allocation2 + $0x8] sm:$0xff] %vm379_vm0, %v1712_v8 }
  0x30 PF: > { %v1592_v9 = vld [vmem:[%s1812_s9 + $0x78] sm:$0xff]   ;;  %v1596_v13 = vld [vmem:[%s1812_s9 + $0x70] sm:$0xff]   ;;  %v1600_v17 = vld [vmem:[%s1812_s9 + $0x68] sm:$0xff]   ;;  %vm1110_vm1 = vcmask 523264   ;;  %p1438_p0 = scmp.ne.s32.totalorder %s1694_s20, 1 }
  0x31   : > { %v1593_v10 = vld [vmem:[%s1812_s9 + $0xf8] sm:$0xff]   ;;  %1447 = vmatprep.subr.bf16.mxu0 %v1592_v9  ;;  %v1597_v14 = vld [vmem:[%s1812_s9 + $0xf0] sm:$0xff]   ;;  %v1601_v18 = vld [vmem:[%s1812_s9 + $0xe8] sm:$0xff]  }
  0x32   : > { %v1594_v11 = vld [vmem:[%s1812_s9 + $0x38] sm:$0xff]   ;;  %1469 = vmatprep.subr.bf16.mxu1 %v1593_v10  ;;  %v1598_v15 = vld [vmem:[%s1812_s9 + $0x30] sm:$0xff]   ;;  %v1602_v19 = vld [vmem:[%s1812_s9 + $0x28] sm:$0xff]  }
  0x33   : > { %v1595_v12 = vld [vmem:[%s1812_s9 + $0xb8] sm:$0xff]   ;;  %1448 = vmatpush3.bf16.msra.mxu0 %v1594_v11  ;;  %v1599_v16 = vld [vmem:[%s1812_s9 + $0xb0] sm:$0xff]   ;;  %v1603_v20 = vld [vmem:[%s1812_s9 + $0xa8] sm:$0xff]  }
  0x34   : > { %1470 = vmatpush3.bf16.msra.mxu1 %v1595_v12  ;;  %1449 = vmatprep.subr.bf16.mxu0 %v1596_v13  ;;  %v1604_v21 = vld [vmem:[%s1812_s9 + $0x60] sm:$0xff]   ;;  %v1608_v25 = vld [vmem:[%s1812_s9 + $0x58] sm:$0xff]   ;;  %v1612_v29 = vld [vmem:[%s1812_s9 + $0x50] sm:$0xff]  }
  0x35   : > { %1471 = vmatprep.subr.bf16.mxu1 %v1597_v14  ;;  %v1605_v22 = vld [vmem:[%s1812_s9 + $0xe0] sm:$0xff]   ;;  %v1609_v26 = vld [vmem:[%s1812_s9 + $0xd8] sm:$0xff]   ;;  %v1613_v30 = vld [vmem:[%s1812_s9 + $0xd0] sm:$0xff]  }
  0x36   : > { %v1606_v23 = vld [vmem:[%s1812_s9 + $0x20] sm:$0xff]   ;;  %v1610_v27 = vld [vmem:[%s1812_s9 + $0x18] sm:$0xff]   ;;  %v1614_v31 = vld [vmem:[%s1812_s9 + $0x10] sm:$0xff]  }
  0x37   : > { %1450 = vmatpush3.bf16.msra.mxu0 %v1598_v15  ;;  %v1607_v24 = vld [vmem:[%s1812_s9 + $0xa0] sm:$0xff]   ;;  %v1611_v28 = vld [vmem:[%s1812_s9 + $0x98] sm:$0xff]   ;;  %v1615_v32 = vld [vmem:[%s1812_s9 + $0x90] sm:$0xff]  }
  0x38   : > { %1472 = vmatpush3.bf16.msra.mxu1 %v1599_v16  ;;  %1451 = vmatprep.subr.bf16.mxu0 %v1600_v17  ;;  %v1616_v33 = vld [vmem:[%s1812_s9 + $0x48] sm:$0xff]   ;;  %v1620_v37 = vld [vmem:[%s1812_s9 + $0x40] sm:$0xff]   ;;  %v384_v41 = vld [vmem:[%s1830_s30] sm:$0xff] }
  0x39   : > { %1473 = vmatprep.subr.bf16.mxu1 %v1601_v18  ;;  %v1617_v34 = vld [vmem:[%s1812_s9 + $0xc8] sm:$0xff]   ;;  %v1621_v38 = vld [vmem:[%s1812_s9 + $0xc0] sm:$0xff]   ;;  %v388_v42 = vld [vmem:[%s1830_s30 + $0x20] sm:$0xff] }
  0x3a   : > { %v1618_v35 = vld [vmem:[%s1812_s9 + $0x8] sm:$0xff]   ;;  %v1622_v39 = vld [vmem:[%s1812_s9] sm:$0xff]   ;;  %v385_v43 = vld [vmem:[%s1830_s30 + $0x8] sm:$0xff]  ;;  %v1366_v44 = vcombine.low %v384_v41, %v388_v42  ;;  %v1367_v45 = vcombine.high %v384_v41, %v388_v42 }
  0x3b   : > { %1452 = vmatpush3.bf16.msra.mxu0 %v1602_v19  ;;  %v1619_v36 = vld [vmem:[%s1812_s9 + $0x88] sm:$0xff]   ;;  %v1623_v40 = vld [vmem:[%s1812_s9 + $0x80] sm:$0xff]   ;;  %v389_v46 = vld [vmem:[%s1830_s30 + $0x28] sm:$0xff] }
  0x3c   : > { %1474 = vmatpush3.bf16.msra.mxu1 %v1603_v20  ;;  %1453 = vmatprep.subr.bf16.mxu0 %v1604_v21  ;;  %v1368_v47 = vcombine.low %v385_v43, %v389_v46  ;;  %v1369_v48 = vcombine.high %v385_v43, %v389_v46  ;;  %v1624_v49 = vld [vmem:[%s1812_s9 + $0x178] sm:$0xff]   ;;  %v1628_v53 = vld [vmem:[%s1812_s9 + $0x170] sm:$0xff]   ;;  %v1632_v57 = vld [vmem:[%s1812_s9 + $0x168] sm:$0xff]  }
  0x3d   : > { %1475 = vmatprep.subr.bf16.mxu1 %v1605_v22  ;;  %976 = vmatprep.mubr.bf16.mxu0 %v1367_v45  ;;  %v1625_v50 = vld [vmem:[%s1812_s9 + $0x1f8] sm:$0xff]   ;;  %v1629_v54 = vld [vmem:[%s1812_s9 + $0x1f0] sm:$0xff]   ;;  %v1633_v58 = vld [vmem:[%s1812_s9 + $0x1e8] sm:$0xff]  }
  0x3e   : > { %1017 = vmatprep.mubr.bf16.mxu1 %v1369_v48  ;;  %v1626_v51 = vld [vmem:[%s1812_s9 + $0x138] sm:$0xff]   ;;  %v1630_v55 = vld [vmem:[%s1812_s9 + $0x130] sm:$0xff]   ;;  %v1634_v59 = vld [vmem:[%s1812_s9 + $0x128] sm:$0xff]  }
  0x3f   : > { %1454 = vmatpush3.bf16.msra.mxu0 %v1606_v23  ;;  %v1627_v52 = vld [vmem:[%s1812_s9 + $0x1b8] sm:$0xff]   ;;  %v1631_v56 = vld [vmem:[%s1812_s9 + $0x1b0] sm:$0xff]   ;;  %v1635_v60 = vld [vmem:[%s1812_s9 + $0x1a8] sm:$0xff]  }
  0x40   : > { %1476 = vmatpush3.bf16.msra.mxu1 %v1607_v24  ;;  %1455 = vmatprep.subr.bf16.mxu0 %v1608_v25  ;;  %v1636_v61 = vld [vmem:[%s1812_s9 + $0x160] sm:$0xff]   ;;  %v1640_v1 = vld [vmem:[%s1812_s9 + $0x158] sm:$0xff]   ;;  %v1644_v5 = vld [vmem:[%s1812_s9 + $0x150] sm:$0xff]  }
  0x41   : > { %1477 = vmatprep.subr.bf16.mxu1 %v1609_v26  ;;  %v1637_v62 = vld [vmem:[%s1812_s9 + $0x1e0] sm:$0xff]   ;;  %v1641_v2 = vld [vmem:[%s1812_s9 + $0x1d8] sm:$0xff]   ;;  %v1645_v6 = vld [vmem:[%s1812_s9 + $0x1d0] sm:$0xff]  }
  0x42   : > { %v1638_v63 = vld [vmem:[%s1812_s9 + $0x120] sm:$0xff]   ;;  %v1642_v3 = vld [vmem:[%s1812_s9 + $0x118] sm:$0xff]   ;;  %v1646_v7 = vld [vmem:[%s1812_s9 + $0x110] sm:$0xff]  }
  0x43   : > { %1456 = vmatpush3.bf16.msra.mxu0 %v1610_v27  ;;  %v1639_v0 = vld [vmem:[%s1812_s9 + $0x1a0] sm:$0xff]   ;;  %v1643_v4 = vld [vmem:[%s1812_s9 + $0x198] sm:$0xff]   ;;  %v1647_v8 = vld [vmem:[%s1812_s9 + $0x190] sm:$0xff]  }
  0x44   : > { %1478 = vmatpush3.bf16.msra.mxu1 %v1611_v28  ;;  %1457 = vmatprep.subr.bf16.mxu0 %v1612_v29  ;;  %v1648_v9 = vld [vmem:[%s1812_s9 + $0x148] sm:$0xff]   ;;  %v1652_v13 = vld [vmem:[%s1812_s9 + $0x140] sm:$0xff]  }
  0x45   : > { %1479 = vmatprep.subr.bf16.mxu1 %v1613_v30  ;;  %v1649_v10 = vld [vmem:[%s1812_s9 + $0x1c8] sm:$0xff]   ;;  %v1653_v14 = vld [vmem:[%s1812_s9 + $0x1c0] sm:$0xff]  }
  0x46   : > { %v1650_v11 = vld [vmem:[%s1812_s9 + $0x108] sm:$0xff]   ;;  %v1654_v15 = vld [vmem:[%s1812_s9 + $0x100] sm:$0xff]  }
  0x47   : > { %1458 = vmatpush3.bf16.msra.mxu0 %v1614_v31  ;;  %v1651_v12 = vld [vmem:[%s1812_s9 + $0x188] sm:$0xff]   ;;  %v1655_v16 = vld [vmem:[%s1812_s9 + $0x180] sm:$0xff]  }
  0x48   : > { %1480 = vmatpush3.bf16.msra.mxu1 %v1615_v32  ;;  %1459 = vmatprep.subr.bf16.mxu0 %v1616_v33  ;;  %v386_v17 = vld [vmem:[%s1830_s30 + $0x10] sm:$0xff]  ;;  %v387_v21 = vld [vmem:[%s1830_s30 + $0x18] sm:$0xff] }
  0x49   : > { %1481 = vmatprep.subr.bf16.mxu1 %v1617_v34  ;;  %v390_v18 = vld [vmem:[%s1830_s30 + $0x30] sm:$0xff]  ;;  %v391_v22 = vld [vmem:[%s1830_s30 + $0x38] sm:$0xff] }
  0x4a   : > { %v1370_v19 = vcombine.low %v386_v17, %v390_v18  ;;  %v1371_v20 = vcombine.high %v386_v17, %v390_v18  ;;  %v1372_v23 = vcombine.low %v387_v21, %v391_v22  ;;  %v1373_v24 = vcombine.high %v387_v21, %v391_v22 }
  0x4b   : > { %1460 = vmatpush3.bf16.msra.mxu0 %v1618_v35 }
  0x4c   : > { %1482 = vmatpush3.bf16.msra.mxu1 %v1619_v36  ;;  %1461 = vmatprep.subr.bf16.mxu0 %v1620_v37 }
  0x4d   : > { %1483 = vmatprep.subr.bf16.mxu1 %v1621_v38 }
  0x4f   : > { %1462 = vmatpush3.bf16.msra.mxu0 %v1622_v39 }
  0x50   : > { %1484 = vmatpush3.bf16.msra.mxu1 %v1623_v40  ;;  %1491 = vmatprep.subr.bf16.mxu0 %v1624_v49 }
  0x51   : > { %1513 = vmatprep.subr.bf16.mxu1 %v1625_v50 }
  0x52   : > { %977 = vmatmul.mubr.bf16.vlgmr.msra.gmra.mxu0 %v1366_v44 }
  0x53   : > { %1018 = vmatmul.mubr.bf16.vlgmr.msra.gmra.mxu1 %v1368_v47  ;;  %1492 = vmatpush3.bf16.msra.mxu0 %v1626_v51  ;;  %v382_v47 = vld [vmem:[#allocation2] sm:$0xff] }
  0x54   : > { %1514 = vmatpush3.bf16.msra.mxu1 %v1627_v52  ;;  %1493 = vmatprep.subr.bf16.mxu0 %v1628_v53 }
  0x55   : > { %1515 = vmatprep.subr.bf16.mxu1 %v1629_v54  ;;  %1058 = vmatprep.mubr.bf16.mxu0 %v1371_v20 }
  0x56   : > { %1099 = vmatprep.mubr.bf16.mxu1 %v1373_v24 }
  0x57   : > { %1494 = vmatpush3.bf16.msra.mxu0 %v1630_v55 }
  0x58   : > { %1516 = vmatpush3.bf16.msra.mxu1 %v1631_v56  ;;  %1495 = vmatprep.subr.bf16.mxu0 %v1632_v57  ;;  %v383_v56 = vld [vmem:[#allocation2 + $0x8] sm:$0xff] }
  0x59   : > { %1517 = vmatprep.subr.bf16.mxu1 %v1633_v58 }
  0x5b   : > { %1496 = vmatpush3.bf16.msra.mxu0 %v1634_v59 }
  0x5c   : > { %1518 = vmatpush3.bf16.msra.mxu1 %v1635_v60  ;;  %1497 = vmatprep.subr.bf16.mxu0 %v1636_v61 }
  0x5d   : > { %1519 = vmatprep.subr.bf16.mxu1 %v1637_v62 }
  0x5f   : > { %1498 = vmatpush3.bf16.msra.mxu0 %v1638_v63 }
  0x60   : > { %1520 = vmatpush3.bf16.msra.mxu1 %v1639_v0  ;;  %1499 = vmatprep.subr.bf16.mxu0 %v1640_v1 }
  0x61   : > { %1521 = vmatprep.subr.bf16.mxu1 %v1641_v2 }
  0x63   : > { %1500 = vmatpush3.bf16.msra.mxu0 %v1642_v3 }
  0x64   : > { %1522 = vmatpush3.bf16.msra.mxu1 %v1643_v4  ;;  %1501 = vmatprep.subr.bf16.mxu0 %v1644_v5 }
  0x65   : > { %1523 = vmatprep.subr.bf16.mxu1 %v1645_v6 }
  0x67   : > { %1502 = vmatpush3.bf16.msra.mxu0 %v1646_v7 }
  0x68   : > { %1524 = vmatpush3.bf16.msra.mxu1 %v1647_v8  ;;  %1503 = vmatprep.subr.bf16.mxu0 %v1648_v9 }
  0x69   : > { %1525 = vmatprep.subr.bf16.mxu1 %v1649_v10 }
  0x6b   : > { %1504 = vmatpush3.bf16.msra.mxu0 %v1650_v11 }
  0x6c   : > { %1526 = vmatpush3.bf16.msra.mxu1 %v1651_v12  ;;  %1505 = vmatprep.subr.bf16.mxu0 %v1652_v13 }
  0x6d   : > { %1527 = vmatprep.subr.bf16.mxu1 %v1653_v14 }
  0x6f   : > { %1506 = vmatpush3.bf16.msra.mxu0 %v1654_v15 }
  0x70   : > { %1528 = vmatpush3.bf16.msra.mxu1 %v1655_v16 }
  0x72   : > { %1059 = vmatmul.mubr.bf16.vlgmr.msra.gmra.mxu0 %v1370_v19 }
  0x73   : > { %1100 = vmatmul.mubr.bf16.vlgmr.msra.gmra.mxu1 %v1372_v23 }
 0x112   : > { %v1463_v25 = vpop.f32.mrf.mxu0 }
 0x113   : > { %v1485_v26 = vpop.f32.mrf.mxu1 }
 0x114   : > { %v1464_v27 = vpop.f32.mrf.mxu0 }
 0x115   : > { %v1486_v28 = vpop.f32.mrf.mxu1  ;;  %v1465_v32 = vadd.f32 %v1464_v27, %v1463_v25 }
 0x116   : > { %v1466_v29 = vpop.f32.mrf.mxu0  ;;  %v1487_v33 = vadd.f32 %v1486_v28, %v1485_v26 }
 0x117   : > { %v1488_v30 = vpop.f32.mrf.mxu1 }
 0x118   : > { %v1467_v31 = vpop.f32.mrf.mxu0  ;;  %v1020_v38 = vadd.f32 %v1487_v33, %v1465_v32 }
 0x119   : > { %v1489_v34 = vpop.f32.mrf.mxu1  ;;  %v1468_v39 = vadd.f32 %v1467_v31, %v1466_v29 }
 0x11a   : > { %v1490_v40 = vadd.f32 %v1489_v34, %v1488_v30 }
 0x11c   : > { %v1023_v49 = vadd.f32 %v1490_v40, %v1468_v39 }
 0x132   : > { %v1507_v35 = vpop.f32.mrf.mxu0 }
 0x133   : > { %v1529_v36 = vpop.f32.mrf.mxu1 }
 0x134   : > { %v1508_v37 = vpop.f32.mrf.mxu0 }
 0x135   : > { %v1509_v41 = vadd.f32 %v1508_v37, %v1507_v35  ;;  %v1530_v42 = vpop.f32.mrf.mxu1 }
 0x136   : > { %v1510_v43 = vpop.f32.mrf.mxu0  ;;  %v1531_v45 = vadd.f32 %v1530_v42, %v1529_v36 }
 0x137   : > { %v1061_v44 = vadd.f32 %v1509_v41, %v1020_v38  ;;  %v1532_v46 = vpop.f32.mrf.mxu1 }
 0x138   : > { %v1511_v48 = vpop.f32.mrf.mxu0 }
 0x139   : > { %v1102_v50 = vadd.f32 %v1531_v45, %v1061_v44  ;;  %v1512_v51 = vadd.f32 %v1511_v48, %v1510_v43  ;;  %v1533_v52 = vpop.f32.mrf.mxu1 }
 0x13a   : > { %v1534_v55 = vadd.f32 %v1533_v52, %v1532_v46 }
 0x13b   : > { %v1108_v53 = vadd.f32 %v1102_v50, %v382_v47  ;;  %v1064_v54 = vadd.f32 %v1512_v51, %v1023_v49 }
 0x13d   : > { %1111 = vst.msk [vmem:[#allocation2] sm:$0xff] %vm1110_vm1, %v1108_v53  ;;  %v1105_v57 = vadd.f32 %v1534_v55, %v1064_v54  ;;  %1116 = sbr.rel (%p1438_p0) target bundleno = 347 (0x15b), region = 63 }
 0x13f   : > { %v1109_v58 = vadd.f32 %v1105_v57, %v383_v56 }
 0x141   : > { %1112 = vst.msk [vmem:[#allocation2 + $0x8] sm:$0xff] %vm1110_vm1, %v1109_v58 }
 0x142   : > { %v1439_v61 = vld [vmem:[%s1950_s2] ss:$0 sm:$0xff]  ;;  %vm1159_vm2 = vcmask 519168   ;;  %vm1128_vm3 = vcmask 516096  }
 0x144   : > { %v1117_v59 = vld [vmem:[#allocation2] sm:$0xff] }
 0x145   : > { %v1119_v62 = vsel %vm1110_vm1, %v1117_v59, 0.0  ;;  %v1130_v63 = vmul.f32 %v1117_v59, %v1117_v59  ;;  %v1149_v1 = vadd.f32 %v1439_v61, %v1117_v59 }
 0x147   : > { %v1132_v4 = vsel %vm1110_vm1, %v1130_v63, 0.0  ;;  %v1445_v5 = vpack.c.bf16 %v1149_v1, %v1149_v1 }
 0x148   : > { %v1118_v60 = vld [vmem:[#allocation2 + $0x8] sm:$0xff] }
 0x149   : > { %v1131_v0 = vmul.f32 %v1118_v60, %v1118_v60  ;;  %v1150_v2 = vadd.f32 %v1439_v61, %v1118_v60  ;;  %v1120_v3 = vsel %vm1110_vm1, %v1118_v60, 0.0  ;;  %1160 = vst.msk [vmem:[%s1820_s12] sm:$0xf] %vm1159_vm2, %v1445_v5 }
 0x14a   : > { %v1121_v6 = vadd.f32 %v1120_v3, %v1119_v62 }
 0x14b   : > { %v1133_v7 = vsel %vm1110_vm1, %v1131_v0, 0.0  ;;  %v1446_v9 = vpack.c.bf16 %v1150_v2, %v1150_v2 }
 0x14c   : > { %v1134_v8 = vadd.f32 %v1133_v7, %v1132_v4  ;;  %v1122_v10 = vrot.slane %v1121_v6, 4 }
 0x14d   : > { %1161 = vst.msk [vmem:[%s1820_s12 + $0x4] sm:$0xf] %vm1159_vm2, %v1446_v9 }
 0x14e   : > { %v1135_v11 = vrot.slane %v1134_v8, 4  ;;  %v1123_v12 = vadd.f32 %v1122_v10, %v1121_v6 }
 0x150   : > { %v1136_v13 = vadd.f32 %v1135_v11, %v1134_v8  ;;  %v1124_v14 = vrot.slane %v1123_v12, 2 }
 0x152   : > { %v1137_v15 = vrot.slane %v1136_v13, 2  ;;  %v1125_v16 = vadd.f32 %v1124_v14, %v1123_v12 }
 0x154   : > { %v1138_v17 = vadd.f32 %v1137_v15, %v1136_v13  ;;  %v1126_v18 = vrot.slane %v1125_v16, 1 }
 0x156   : > { %v1139_v19 = vrot.slane %v1138_v17, 1  ;;  %v1127_v20 = vadd.f32 %v1126_v18, %v1125_v16 }
 0x158   : > { %v1140_v21 = vadd.f32 %v1139_v19, %v1138_v17  ;;  %1129 = vst.msk [vmem:[%s367_s15] sm:$0x1] %vm1128_vm3, %v1127_v20 }
 0x15a   : > { %1141 = vst.msk [vmem:[%s373_s27] sm:$0x1] %vm1128_vm3, %v1140_v21 }
 0x15b PF: > { %s16_s24 = sadd.s32 1, %s1710_s24   ;;  %s1954_s18 = smov %s1690_s19 }
 0x15c   : > { %p13_p1 = scmp.ge.s32.totalorder %s16_s24, 6   ;;  %s1955_s19 = smov %s1794_s6 }
 0x15d   : > { %s1956_s20 = smov %s1702_s22  ;;  %s1957_s21 = smov %s1706_s23 }
 0x15e   : > { %s1958_s22 = smov %s1961_s25  ;;  %s1959_s23 = smov %s1965_s26 }
 0x15f   :  { %15 = sbr.rel (!%p13_p1) target bundleno = 4 (0x4), region = 128 }

// kernel: nlayer_3d_discriminator_forward.15
= control target key start
LH: loop header
LB: loop body
LE: loop exit
PB: predicated region body
PF: predicated region fallthrough
CT: control target
= control target key end

     0   :  { %s1897_s0 = inlined_call_operand.vmem [shape: bf16[64,4096], index: 0, kind: input, shape index: {}]   ;;  %s1898_s1 = inlined_call_operand.vmem [shape: bf16[4096,1], index: 1, kind: input, shape index: {}]   ;;  %s1899_s2 = inlined_call_operand.<no memory space> [shape: f32[1,1], index: 2, kind: input, shape index: {}]   ;;  %s1900_s3 = inlined_call_operand.vmem [shape: f32[64,1], index: 3, kind: output, shape index: {}]  }
   0x1   :  { %v8_v0 = vstv %s1899_s2 }
   0x2   :  { %9 = vst [vmem:[#allocation3] sm:$0x1] %v8_v0 }
   0x3   :  { %s1687_s14 = smov 0   ;;  %s1689_s15 = smov 0  }
   0x4   :  { %s1691_s16 = smov 0   ;;  %s1693_s17 = smov 0  }
   0x5   :  { %s1695_s18 = smov 0   ;;  %s1697_s19 = smov 0  }
   0x6   :  { %s1699_s20 = smov 0  }
   0x7 LB: > { %s27_s2 = sadd.s32 1, %s1653_s18  ;;  %s34_s21 = sadd.s32 1, %s1657_s19  ;;  %s1661_s20 = sphi %s1699_s20, %s15_s20   ;;  %s1657_s19 = sphi %s1697_s19, %s1906_s19   ;;  %s1653_s18 = sphi %s1695_s18, %s1905_s18   ;;  %s1649_s17 = sphi %s1693_s17, %s1904_s17   ;;  %s1645_s16 = sphi %s1691_s16, %s1903_s16   ;;  %s1641_s15 = sphi %s1689_s15, %s1902_s15   ;;  %s1637_s14 = sphi %s1687_s14, %s1901_s14  }
   0x8   : > { %p28_p0 = scmp.ge.s32.totalorder %s27_s2, 4  ;;  %p50_p1 = scmp.ne.s32.totalorder %s1641_s15, %s1637_s14 }
   0x9   : > { %p51_p2 = scmp.eq.s32.totalorder %s1661_s20, 0  ;;  %s43_s25 = sadd.s32 1, %s1641_s15 }
   0xa   : > { %s1908_s2 = smov (%p28_p0, %s27_s2), 0  ;;  %s1910_s21 = smov (!%p28_p0, %s34_s21), %s1657_s19 }
   0xb   : > { %p52_p3 = por %p51_p2, %p50_p1  ;;  %p36_p4 = scmp.ge.s32.totalorder %s1910_s21, 2 }
   0xc   : > { %s39_s22 = ssub.s32 %s1653_s18, %s1908_s2  ;;  %p1276_p6 = scmp.ge.s32.totalorder %s1661_s20, 8 }
   0xd   : > { %s1912_s21 = smov (%p36_p4, %s1910_s21), 0 }
   0xe   : > { %s38_s23 = ssub.s32 %s1657_s19, %s1912_s21  ;;  %164 = sbr.rel (%p1276_p6) target bundleno = 34 (0x22), region = 20 }
   0xf   : > { %s40_s24 = sor.u32 %s39_s22, %s38_s23 }
  0x10   : > { %p41_p5 = scmp.eq.s32.totalorder %s40_s24, 0 }
  0x12   : > { %s1738_s26 = scalar_select %p41_p5, %s1641_s15, %s43_s25  }
  0x13   : > { %167 = sbr.rel (!%p52_p3) target bundleno = 34 (0x22), region = 24  ;;  %s169_s27 = sand.u32 (%p52_p3), 1, %s1641_s15  }
  0x14   : > { %s1279_s28 = sshll.u32 (%p52_p3), %s1653_s18, 3  ;;  %s1277_s29 = sshll.u32 (%p52_p3), %s169_s27, 7 }
  0x15   : > { %s1373_s30 = sshll.u32 (%p52_p3), %s1657_s19, 7  ;;  %s171_s9 = scalar_lea.vmem (%p52_p3), [#allocation4], %s1277_s29 }
  0x16   : > { %s175_s4 = sadd.s32 (%p52_p3), %s1373_s30, %s1279_s28 }
  0x17   : > { %s1281_s5 = sshll.u32 (%p52_p3), %s175_s4, 2 }
  0x18   : > { %s1747_s8 = scalar_lea.vmem %s1897_s0, %s1281_s5 }
  0x19   : > { %v190_v1 = vld [vmem:[%s1747_s8] sm:$0xff]  ;;  %v192_v2 = vld [vmem:[%s1747_s8 + $0x8] sm:$0xff]  ;;  %v194_v3 = vld [vmem:[%s1747_s8 + $0x10] sm:$0xff] }
  0x1a   : > { %191 = vst [vmem:[%s171_s9] sm:$0xff] %v190_v1  ;;  %193 = vst [vmem:[%s171_s9 + $0x8] sm:$0xff] %v192_v2  ;;  %v196_v4 = vld [vmem:[%s1747_s8 + $0x18] sm:$0xff]  ;;  %v198_v5 = vld [vmem:[%s1747_s8 + $0x80] sm:$0xff] }
  0x1b   : > { %195 = vst [vmem:[%s171_s9 + $0x10] sm:$0xff] %v194_v3  ;;  %v200_v6 = vld [vmem:[%s1747_s8 + $0x88] sm:$0xff]  ;;  %197 = vst [vmem:[%s171_s9 + $0x18] sm:$0xff] %v196_v4  ;;  %v202_v7 = vld [vmem:[%s1747_s8 + $0x90] sm:$0xff] }
  0x1c   : > { %199 = vst [vmem:[%s171_s9 + $0x20] sm:$0xff] %v198_v5  ;;  %201 = vst [vmem:[%s171_s9 + $0x28] sm:$0xff] %v200_v6  ;;  %v204_v8 = vld [vmem:[%s1747_s8 + $0x98] sm:$0xff]  ;;  %v206_v9 = vld [vmem:[%s1747_s8 + $0x100] sm:$0xff] }
  0x1d   : > { %203 = vst [vmem:[%s171_s9 + $0x30] sm:$0xff] %v202_v7  ;;  %205 = vst [vmem:[%s171_s9 + $0x38] sm:$0xff] %v204_v8  ;;  %v208_v10 = vld [vmem:[%s1747_s8 + $0x108] sm:$0xff]  ;;  %v210_v11 = vld [vmem:[%s1747_s8 + $0x110] sm:$0xff] }
  0x1e   : > { %207 = vst [vmem:[%s171_s9 + $0x40] sm:$0xff] %v206_v9  ;;  %v212_v12 = vld [vmem:[%s1747_s8 + $0x118] sm:$0xff]  ;;  %209 = vst [vmem:[%s171_s9 + $0x48] sm:$0xff] %v208_v10  ;;  %v214_v13 = vld [vmem:[%s1747_s8 + $0x180] sm:$0xff] }
  0x1f   : > { %211 = vst [vmem:[%s171_s9 + $0x50] sm:$0xff] %v210_v11  ;;  %213 = vst [vmem:[%s171_s9 + $0x58] sm:$0xff] %v212_v12  ;;  %v216_v14 = vld [vmem:[%s1747_s8 + $0x188] sm:$0xff]  ;;  %v218_v15 = vld [vmem:[%s1747_s8 + $0x190] sm:$0xff] }
  0x20   : > { %215 = vst [vmem:[%s171_s9 + $0x60] sm:$0xff] %v214_v13  ;;  %217 = vst [vmem:[%s171_s9 + $0x68] sm:$0xff] %v216_v14  ;;  %v220_v16 = vld [vmem:[%s1747_s8 + $0x198] sm:$0xff] }
  0x21   : > { %219 = vst [vmem:[%s171_s9 + $0x70] sm:$0xff] %v218_v15  ;;  %221 = vst [vmem:[%s171_s9 + $0x78] sm:$0xff] %v220_v16 }
  0x22 PF: > { %p1282_p7 = scmp.ge.s32.totalorder %s1661_s20, 1  ;;  %p238_p8 = scmp.lt.s32.totalorder %s1661_s20, 9 }
  0x24   : > { %p239_p9 = pnand %p1282_p7, %p238_p8 }
  0x25   : > { %s245_s10 = sand.u32 (!%p239_p9), 1, %s1637_s14   ;;  %s1284_s11 = sshll.u32 (!%p239_p9), %s1645_s16, 7 }
  0x26   : > { %242 = sbr.rel (%p239_p9) target bundleno = 346 (0x15a), region = 51  ;;  %s1283_s12 = sshll.u32 (!%p239_p9), %s245_s10, 7 }
  0x27   : > { %p285_p10 = scmp.lt.s32.totalorder (!%p239_p9), %s1284_s11, 511  ;;  %s1286_s13 = sshll.u32 (!%p239_p9), %s1649_s17, 2 }
  0x28   : > { %p297_p11 = scmp.lt.s32.totalorder (!%p239_p9), %s1286_s13, 7  ;;  %s1780_s14 = scalar_lea.vmem (!%p239_p9), [#allocation4], %s1283_s12 }
  0x29   : > { %p1288_p12 = scmp.ne.s32.totalorder (!%p239_p9), %s1645_s16, 0 }
  0x2b   : > { %s1914_s11 = smov (!%p285_p10, %s1284_s11), 511  ;;  %s1916_s13 = smov (!%p297_p11, %s1286_s13), 7 }
  0x2c   : > { %s1285_s22 = sshll.u32 %s1914_s11, 2  ;;  %s1287_s27 = sshll.u32 %s1916_s13, 3 }
  0x2d   : > { %s1773_s25 = scalar_lea.vmem %s1898_s1, %s1285_s22  ;;  %s1778_s30 = scalar_lea.vmem %s1900_s3, %s1287_s27 }
  0x2e   : > { %309 = sbr.rel (%p1288_p12) target bundleno = 54 (0x36), region = 59 }
  0x33   : > { %vm310_vm0 = vcmask 7168   ;;  %v1663_v17 = vmov 0.0  }
  0x34   : > { %311 = vst.msk [vmem:[#allocation2] sm:$0xff] %vm310_vm0, %v1663_v17  ;;  %312 = vst.msk [vmem:[#allocation2 + $0x8] sm:$0xff] %vm310_vm0, %v1663_v17 }
  0x35   : > { %313 = vst.msk [vmem:[#allocation2 + $0x10] sm:$0xff] %vm310_vm0, %v1663_v17  ;;  %314 = vst.msk [vmem:[#allocation2 + $0x18] sm:$0xff] %vm310_vm0, %v1663_v17 }
  0x36 PF: > { %v1543_v18 = vld [vmem:[%s1773_s25 + $0x78] sm:$0xff]   ;;  %v1547_v22 = vld [vmem:[%s1773_s25 + $0x70] sm:$0xff]   ;;  %v1551_v26 = vld [vmem:[%s1773_s25 + $0x68] sm:$0xff]   ;;  %vm1127_vm1 = vcmask 7168   ;;  %p1369_p13 = scmp.ne.s32.totalorder %s1645_s16, 3 }
  0x37   : > { %v1544_v19 = vld [vmem:[%s1773_s25 + $0xf8] sm:$0xff]   ;;  %1374 = vmatprep.subr.bf16.mxu0 %v1543_v18  ;;  %v1548_v23 = vld [vmem:[%s1773_s25 + $0xf0] sm:$0xff]   ;;  %v1552_v27 = vld [vmem:[%s1773_s25 + $0xe8] sm:$0xff]  }
  0x38   : > { %v1545_v20 = vld [vmem:[%s1773_s25 + $0x38] sm:$0xff]   ;;  %1402 = vmatprep.subr.bf16.mxu1 %v1544_v19  ;;  %v1549_v24 = vld [vmem:[%s1773_s25 + $0x30] sm:$0xff]   ;;  %v1553_v28 = vld [vmem:[%s1773_s25 + $0x28] sm:$0xff]  }
  0x39   : > { %v1546_v21 = vld [vmem:[%s1773_s25 + $0xb8] sm:$0xff]   ;;  %1375 = vmatpush3.bf16.msra.mxu0 %v1545_v20  ;;  %v1550_v25 = vld [vmem:[%s1773_s25 + $0xb0] sm:$0xff]   ;;  %v1554_v29 = vld [vmem:[%s1773_s25 + $0xa8] sm:$0xff]  }
  0x3a   : > { %1403 = vmatpush3.bf16.msra.mxu1 %v1546_v21  ;;  %1376 = vmatprep.subr.bf16.mxu0 %v1547_v22  ;;  %v1555_v30 = vld [vmem:[%s1773_s25 + $0x60] sm:$0xff]   ;;  %v1559_v34 = vld [vmem:[%s1773_s25 + $0x58] sm:$0xff]   ;;  %v1563_v38 = vld [vmem:[%s1773_s25 + $0x50] sm:$0xff]  }
  0x3b   : > { %1404 = vmatprep.subr.bf16.mxu1 %v1548_v23  ;;  %v1556_v31 = vld [vmem:[%s1773_s25 + $0xe0] sm:$0xff]   ;;  %v1560_v35 = vld [vmem:[%s1773_s25 + $0xd8] sm:$0xff]   ;;  %v1564_v39 = vld [vmem:[%s1773_s25 + $0xd0] sm:$0xff]  }
  0x3c   : > { %v1557_v32 = vld [vmem:[%s1773_s25 + $0x20] sm:$0xff]   ;;  %v1561_v36 = vld [vmem:[%s1773_s25 + $0x18] sm:$0xff]   ;;  %v1565_v40 = vld [vmem:[%s1773_s25 + $0x10] sm:$0xff]  }
  0x3d   : > { %1377 = vmatpush3.bf16.msra.mxu0 %v1549_v24  ;;  %v1558_v33 = vld [vmem:[%s1773_s25 + $0xa0] sm:$0xff]   ;;  %v1562_v37 = vld [vmem:[%s1773_s25 + $0x98] sm:$0xff]   ;;  %v1566_v41 = vld [vmem:[%s1773_s25 + $0x90] sm:$0xff]  }
  0x3e   : > { %1405 = vmatpush3.bf16.msra.mxu1 %v1550_v25  ;;  %1378 = vmatprep.subr.bf16.mxu0 %v1551_v26  ;;  %v1567_v42 = vld [vmem:[%s1773_s25 + $0x48] sm:$0xff]   ;;  %v1571_v46 = vld [vmem:[%s1773_s25 + $0x40] sm:$0xff]   ;;  %v1575_v58 = vld [vmem:[%s1773_s25 + $0x178] sm:$0xff]  }
  0x3f   : > { %1406 = vmatprep.subr.bf16.mxu1 %v1552_v27  ;;  %v1568_v43 = vld [vmem:[%s1773_s25 + $0xc8] sm:$0xff]   ;;  %v1572_v47 = vld [vmem:[%s1773_s25 + $0xc0] sm:$0xff]   ;;  %v1576_v59 = vld [vmem:[%s1773_s25 + $0x1f8] sm:$0xff]  }
  0x40   : > { %v1569_v44 = vld [vmem:[%s1773_s25 + $0x8] sm:$0xff]   ;;  %v1573_v48 = vld [vmem:[%s1773_s25] sm:$0xff]   ;;  %v1577_v60 = vld [vmem:[%s1773_s25 + $0x138] sm:$0xff]  }
  0x41   : > { %1379 = vmatpush3.bf16.msra.mxu0 %v1553_v28  ;;  %v1570_v45 = vld [vmem:[%s1773_s25 + $0x88] sm:$0xff]   ;;  %v1574_v49 = vld [vmem:[%s1773_s25 + $0x80] sm:$0xff]   ;;  %v1578_v61 = vld [vmem:[%s1773_s25 + $0x1b8] sm:$0xff]  }
  0x42   : > { %1407 = vmatpush3.bf16.msra.mxu1 %v1554_v29  ;;  %1380 = vmatprep.subr.bf16.mxu0 %v1555_v30  ;;  %v319_v50 = vld [vmem:[%s1780_s14] sm:$0xff]  ;;  %v320_v52 = vld [vmem:[%s1780_s14 + $0x8] sm:$0xff]  ;;  %v1591_v10 = vld [vmem:[%s1773_s25 + $0x158] sm:$0xff]  }
  0x43   : > { %1408 = vmatprep.subr.bf16.mxu1 %v1556_v31  ;;  %v323_v51 = vld [vmem:[%s1780_s14 + $0x20] sm:$0xff]  ;;  %v324_v55 = vld [vmem:[%s1780_s14 + $0x28] sm:$0xff]  ;;  %v1592_v11 = vld [vmem:[%s1773_s25 + $0x1d8] sm:$0xff]  }
  0x44   : > { %v1289_v53 = vcombine.low %v319_v50, %v323_v51  ;;  %v1290_v54 = vcombine.high %v319_v50, %v323_v51  ;;  %v1291_v56 = vcombine.low %v320_v52, %v324_v55  ;;  %v1292_v57 = vcombine.high %v320_v52, %v324_v55  ;;  %v1579_v62 = vld [vmem:[%s1773_s25 + $0x170] sm:$0xff]   ;;  %v1583_v2 = vld [vmem:[%s1773_s25 + $0x168] sm:$0xff]   ;;  %v1587_v6 = vld [vmem:[%s1773_s25 + $0x160] sm:$0xff]  }
  0x45   : > { %1381 = vmatpush3.bf16.msra.mxu0 %v1557_v32  ;;  %v1580_v63 = vld [vmem:[%s1773_s25 + $0x1f0] sm:$0xff]   ;;  %v1584_v3 = vld [vmem:[%s1773_s25 + $0x1e8] sm:$0xff]   ;;  %v1588_v7 = vld [vmem:[%s1773_s25 + $0x1e0] sm:$0xff]  }
  0x46   : > { %1409 = vmatpush3.bf16.msra.mxu1 %v1558_v33  ;;  %1382 = vmatprep.subr.bf16.mxu0 %v1559_v34  ;;  %v1581_v0 = vld [vmem:[%s1773_s25 + $0x130] sm:$0xff]   ;;  %v1585_v4 = vld [vmem:[%s1773_s25 + $0x128] sm:$0xff]   ;;  %v1589_v8 = vld [vmem:[%s1773_s25 + $0x120] sm:$0xff]  }
  0x47   : > { %1410 = vmatprep.subr.bf16.mxu1 %v1560_v35  ;;  %959 = vmatprep.mubr.bf16.mxu0 %v1290_v54  ;;  %v1582_v1 = vld [vmem:[%s1773_s25 + $0x1b0] sm:$0xff]   ;;  %v1586_v5 = vld [vmem:[%s1773_s25 + $0x1a8] sm:$0xff]   ;;  %v1590_v9 = vld [vmem:[%s1773_s25 + $0x1a0] sm:$0xff]  }
  0x48   : > { %1008 = vmatprep.mubr.bf16.mxu1 %v1292_v57  ;;  %v327_v12 = vld [vmem:[%s1780_s14 + $0x40] sm:$0xff]  ;;  %v328_v15 = vld [vmem:[%s1780_s14 + $0x48] sm:$0xff]  ;;  %v1593_v19 = vld [vmem:[%s1773_s25 + $0x118] sm:$0xff]  }
  0x49   : > { %1383 = vmatpush3.bf16.msra.mxu0 %v1561_v36  ;;  %v331_v13 = vld [vmem:[%s1780_s14 + $0x60] sm:$0xff]  ;;  %v332_v16 = vld [vmem:[%s1780_s14 + $0x68] sm:$0xff]  ;;  %v1594_v21 = vld [vmem:[%s1773_s25 + $0x198] sm:$0xff]  }
  0x4a   : > { %1411 = vmatpush3.bf16.msra.mxu1 %v1562_v37  ;;  %1384 = vmatprep.subr.bf16.mxu0 %v1563_v38  ;;  %v1298_v14 = vcombine.high %v327_v12, %v331_v13  ;;  %v1297_v17 = vcombine.low %v327_v12, %v331_v13  ;;  %v1300_v18 = vcombine.high %v328_v15, %v332_v16  ;;  %v1595_v22 = vld [vmem:[%s1773_s25 + $0x150] sm:$0xff]   ;;  %v1599_v26 = vld [vmem:[%s1773_s25 + $0x148] sm:$0xff]   ;;  %v1603_v30 = vld [vmem:[%s1773_s25 + $0x140] sm:$0xff]  }
  0x4b   : > { %1412 = vmatprep.subr.bf16.mxu1 %v1564_v39  ;;  %v1299_v20 = vcombine.low %v328_v15, %v332_v16  ;;  %v1596_v23 = vld [vmem:[%s1773_s25 + $0x1d0] sm:$0xff]   ;;  %v1600_v27 = vld [vmem:[%s1773_s25 + $0x1c8] sm:$0xff]   ;;  %v1604_v31 = vld [vmem:[%s1773_s25 + $0x1c0] sm:$0xff]  }
  0x4c   : > { %v1597_v24 = vld [vmem:[%s1773_s25 + $0x110] sm:$0xff]   ;;  %v1601_v28 = vld [vmem:[%s1773_s25 + $0x108] sm:$0xff]   ;;  %v1605_v32 = vld [vmem:[%s1773_s25 + $0x100] sm:$0xff]  }
  0x4d   : > { %1385 = vmatpush3.bf16.msra.mxu0 %v1565_v40  ;;  %v1598_v25 = vld [vmem:[%s1773_s25 + $0x190] sm:$0xff]   ;;  %v1602_v29 = vld [vmem:[%s1773_s25 + $0x188] sm:$0xff]   ;;  %v1606_v33 = vld [vmem:[%s1773_s25 + $0x180] sm:$0xff]  }
  0x4e   : > { %1413 = vmatpush3.bf16.msra.mxu1 %v1566_v41  ;;  %1386 = vmatprep.subr.bf16.mxu0 %v1567_v42  ;;  %v321_v34 = vld [vmem:[%s1780_s14 + $0x10] sm:$0xff]  ;;  %v322_v36 = vld [vmem:[%s1780_s14 + $0x18] sm:$0xff] }
  0x4f   : > { %1414 = vmatprep.subr.bf16.mxu1 %v1568_v43  ;;  %v325_v35 = vld [vmem:[%s1780_s14 + $0x30] sm:$0xff]  ;;  %v326_v37 = vld [vmem:[%s1780_s14 + $0x38] sm:$0xff] }
  0x50   : > { %v1293_v38 = vcombine.low %v321_v34, %v325_v35  ;;  %v1294_v39 = vcombine.high %v321_v34, %v325_v35  ;;  %v1295_v40 = vcombine.low %v322_v36, %v326_v37  ;;  %v1296_v41 = vcombine.high %v322_v36, %v326_v37  ;;  %v329_v42 = vld [vmem:[%s1780_s14 + $0x50] sm:$0xff] }
  0x51   : > { %1387 = vmatpush3.bf16.msra.mxu0 %v1569_v44  ;;  %v333_v43 = vld [vmem:[%s1780_s14 + $0x70] sm:$0xff]  ;;  %v330_v44 = vld [vmem:[%s1780_s14 + $0x58] sm:$0xff] }
  0x52   : > { %1415 = vmatpush3.bf16.msra.mxu1 %v1570_v45  ;;  %1388 = vmatprep.subr.bf16.mxu0 %v1571_v46  ;;  %v1302_v45 = vcombine.high %v329_v42, %v333_v43  ;;  %v334_v46 = vld [vmem:[%s1780_s14 + $0x78] sm:$0xff] }
  0x53   : > { %1416 = vmatprep.subr.bf16.mxu1 %v1572_v47  ;;  %v1304_v47 = vcombine.high %v330_v44, %v334_v46 }
  0x55   : > { %1389 = vmatpush3.bf16.msra.mxu0 %v1573_v48  ;;  %v1301_v48 = vcombine.low %v329_v42, %v333_v43  ;;  %v317_v42 = vld [vmem:[#allocation2 + $0x10] sm:$0xff] }
  0x56   : > { %1417 = vmatpush3.bf16.msra.mxu1 %v1574_v49  ;;  %1430 = vmatprep.subr.bf16.mxu0 %v1575_v58  ;;  %v1303_v49 = vcombine.low %v330_v44, %v334_v46 }
  0x57   : > { %1458 = vmatprep.subr.bf16.mxu1 %v1576_v59 }
  0x58   : > { %960 = vmatmul.mubr.bf16.vlgmr.msra.gmra.mxu0 %v1289_v53 }
  0x59   : > { %1009 = vmatmul.mubr.bf16.vlgmr.msra.gmra.mxu1 %v1291_v56  ;;  %1431 = vmatpush3.bf16.msra.mxu0 %v1577_v60 }
  0x5a   : > { %1459 = vmatpush3.bf16.msra.mxu1 %v1578_v61  ;;  %1432 = vmatprep.subr.bf16.mxu0 %v1579_v62 }
  0x5b   : > { %1460 = vmatprep.subr.bf16.mxu1 %v1580_v63  ;;  %967 = vmatprep.mubr.bf16.mxu0 %v1298_v14 }
  0x5c   : > { %1016 = vmatprep.mubr.bf16.mxu1 %v1300_v18  ;;  %v315_v18 = vld [vmem:[#allocation2] sm:$0xff] }
  0x5d   : > { %1433 = vmatpush3.bf16.msra.mxu0 %v1581_v0 }
  0x5e   : > { %1461 = vmatpush3.bf16.msra.mxu1 %v1582_v1  ;;  %1434 = vmatprep.subr.bf16.mxu0 %v1583_v2 }
  0x5f   : > { %1462 = vmatprep.subr.bf16.mxu1 %v1584_v3 }
  0x60   : > { %968 = vmatmul.mubr.bf16.gmra.mxu0 %v1297_v17 }
  0x61   : > { %1435 = vmatpush3.bf16.msra.mxu0 %v1585_v4  ;;  %1017 = vmatmul.mubr.bf16.gmra.mxu1 %v1299_v20 }
  0x62   : > { %1463 = vmatpush3.bf16.msra.mxu1 %v1586_v5  ;;  %1436 = vmatprep.subr.bf16.mxu0 %v1587_v6 }
  0x63   : > { %1464 = vmatprep.subr.bf16.mxu1 %v1588_v7  ;;  %1057 = vmatprep.mubr.bf16.mxu0 %v1294_v39 }
  0x64   : > { %1106 = vmatprep.mubr.bf16.mxu1 %v1296_v41 }
  0x65   : > { %1437 = vmatpush3.bf16.msra.mxu0 %v1589_v8 }
  0x66   : > { %1465 = vmatpush3.bf16.msra.mxu1 %v1590_v9  ;;  %1438 = vmatprep.subr.bf16.mxu0 %v1591_v10 }
  0x67   : > { %1466 = vmatprep.subr.bf16.mxu1 %v1592_v11 }
  0x69   : > { %1439 = vmatpush3.bf16.msra.mxu0 %v1593_v19 }
  0x6a   : > { %1467 = vmatpush3.bf16.msra.mxu1 %v1594_v21  ;;  %1440 = vmatprep.subr.bf16.mxu0 %v1595_v22 }
  0x6b   : > { %1468 = vmatprep.subr.bf16.mxu1 %v1596_v23 }
  0x6d   : > { %1441 = vmatpush3.bf16.msra.mxu0 %v1597_v24 }
  0x6e   : > { %1469 = vmatpush3.bf16.msra.mxu1 %v1598_v25  ;;  %1442 = vmatprep.subr.bf16.mxu0 %v1599_v26 }
  0x6f   : > { %1470 = vmatprep.subr.bf16.mxu1 %v1600_v27 }
  0x71   : > { %1443 = vmatpush3.bf16.msra.mxu0 %v1601_v28 }
  0x72   : > { %1471 = vmatpush3.bf16.msra.mxu1 %v1602_v29  ;;  %1444 = vmatprep.subr.bf16.mxu0 %v1603_v30  ;;  %v316_v30 = vld [vmem:[#allocation2 + $0x8] sm:$0xff] }
  0x73   : > { %1472 = vmatprep.subr.bf16.mxu1 %v1604_v31 }
  0x75   : > { %1445 = vmatpush3.bf16.msra.mxu0 %v1605_v32 }
  0x76   : > { %1473 = vmatpush3.bf16.msra.mxu1 %v1606_v33 }
  0x78   : > { %1058 = vmatmul.mubr.bf16.vlgmr.msra.gmra.mxu0 %v1293_v38 }
  0x79   : > { %1107 = vmatmul.mubr.bf16.vlgmr.msra.gmra.mxu1 %v1295_v40  ;;  %1065 = vmatprep.mubr.bf16.mxu0 %v1302_v45 }
  0x7a   : > { %1114 = vmatprep.mubr.bf16.mxu1 %v1304_v47 }
  0x80   : > { %1066 = vmatmul.mubr.bf16.gmra.mxu0 %v1301_v48 }
  0x81   : > { %1115 = vmatmul.mubr.bf16.gmra.mxu1 %v1303_v49 }
 0x118   : > { %v1390_v50 = vpop.f32.mrf.mxu0 }
 0x119   : > { %v1418_v51 = vpop.f32.mrf.mxu1 }
 0x11a   : > { %v1391_v52 = vpop.f32.mrf.mxu0 }
 0x11b   : > { %v1419_v53 = vpop.f32.mrf.mxu1  ;;  %v1392_v2 = vadd.f32 %v1391_v52, %v1390_v50 }
 0x11c   : > { %v1393_v54 = vpop.f32.mrf.mxu0  ;;  %v1420_v3 = vadd.f32 %v1419_v53, %v1418_v51  ;;  %v318_v51 = vld [vmem:[#allocation2 + $0x18] sm:$0xff] }
 0x11d   : > { %v1421_v55 = vpop.f32.mrf.mxu1 }
 0x11e   : > { %v1394_v56 = vpop.f32.mrf.mxu0  ;;  %v1011_v8 = vadd.f32 %v1420_v3, %v1392_v2 }
 0x11f   : > { %v1422_v57 = vpop.f32.mrf.mxu1  ;;  %v1395_v9 = vadd.f32 %v1394_v56, %v1393_v54 }
 0x120   : > { %v1396_v58 = vpop.f32.mrf.mxu0  ;;  %v1423_v10 = vadd.f32 %v1422_v57, %v1421_v55 }
 0x121   : > { %v1424_v59 = vpop.f32.mrf.mxu1 }
 0x122   : > { %v1397_v60 = vpop.f32.mrf.mxu0  ;;  %v1014_v21 = vadd.f32 %v1423_v10, %v1395_v9 }
 0x123   : > { %v1425_v61 = vpop.f32.mrf.mxu1  ;;  %v1398_v16 = vadd.f32 %v1397_v60, %v1396_v58 }
 0x124   : > { %v1399_v62 = vpop.f32.mrf.mxu0  ;;  %v1426_v17 = vadd.f32 %v1425_v61, %v1424_v59 }
 0x125   : > { %v1427_v63 = vpop.f32.mrf.mxu1 }
 0x126   : > { %v1400_v0 = vpop.f32.mrf.mxu0  ;;  %v1019_v29 = vadd.f32 %v1426_v17, %v1398_v16 }
 0x127   : > { %v1428_v1 = vpop.f32.mrf.mxu1  ;;  %v1401_v33 = vadd.f32 %v1400_v0, %v1399_v62 }
 0x128   : > { %v1429_v34 = vadd.f32 %v1428_v1, %v1427_v63 }
 0x12a   : > { %v1022_v45 = vadd.f32 %v1429_v34, %v1401_v33 }
 0x138   : > { %v1446_v4 = vpop.f32.mrf.mxu0 }
 0x139   : > { %v1474_v5 = vpop.f32.mrf.mxu1 }
 0x13a   : > { %v1447_v6 = vpop.f32.mrf.mxu0 }
 0x13b   : > { %v1475_v7 = vpop.f32.mrf.mxu1  ;;  %v1448_v11 = vadd.f32 %v1447_v6, %v1446_v4 }
 0x13c   : > { %v1449_v12 = vpop.f32.mrf.mxu0  ;;  %v1476_v15 = vadd.f32 %v1475_v7, %v1474_v5 }
 0x13d   : > { %v1477_v13 = vpop.f32.mrf.mxu1  ;;  %v1060_v14 = vadd.f32 %v1448_v11, %v1011_v8 }
 0x13e   : > { %v1450_v19 = vpop.f32.mrf.mxu0 }
 0x13f   : > { %v1478_v20 = vpop.f32.mrf.mxu1  ;;  %v1109_v22 = vadd.f32 %v1476_v15, %v1060_v14  ;;  %v1451_v23 = vadd.f32 %v1450_v19, %v1449_v12 }
 0x140   : > { %v1452_v24 = vpop.f32.mrf.mxu0  ;;  %v1479_v28 = vadd.f32 %v1478_v20, %v1477_v13 }
 0x141   : > { %v1480_v25 = vpop.f32.mrf.mxu1  ;;  %v1123_v26 = vadd.f32 %v1109_v22, %v315_v18  ;;  %v1063_v27 = vadd.f32 %v1451_v23, %v1014_v21 }
 0x142   : > { %v1453_v31 = vpop.f32.mrf.mxu0 }
 0x143   : > { %v1481_v32 = vpop.f32.mrf.mxu1  ;;  %1128 = vst.msk [vmem:[#allocation2] sm:$0xff] %vm1127_vm1, %v1123_v26  ;;  %v1112_v35 = vadd.f32 %v1479_v28, %v1063_v27  ;;  %v1454_v36 = vadd.f32 %v1453_v31, %v1452_v24 }
 0x144   : > { %v1455_v37 = vpop.f32.mrf.mxu0  ;;  %v1482_v41 = vadd.f32 %v1481_v32, %v1480_v25 }
 0x145   : > { %v1483_v38 = vpop.f32.mrf.mxu1  ;;  %v1124_v39 = vadd.f32 %v1112_v35, %v316_v30  ;;  %v1068_v40 = vadd.f32 %v1454_v36, %v1019_v29 }
 0x146   : > { %v1456_v43 = vpop.f32.mrf.mxu0 }
 0x147   : > { %v1484_v44 = vpop.f32.mrf.mxu1  ;;  %1129 = vst.msk [vmem:[#allocation2 + $0x8] sm:$0xff] %vm1127_vm1, %v1124_v39  ;;  %v1117_v46 = vadd.f32 %v1482_v41, %v1068_v40  ;;  %v1457_v47 = vadd.f32 %v1456_v43, %v1455_v37 }
 0x148   : > { %v1485_v50 = vadd.f32 %v1484_v44, %v1483_v38 }
 0x149   : > { %v1125_v48 = vadd.f32 %v1117_v46, %v317_v42  ;;  %v1071_v49 = vadd.f32 %v1457_v47, %v1022_v45 }
 0x14b   : > { %1130 = vst.msk [vmem:[#allocation2 + $0x10] sm:$0xff] %vm1127_vm1, %v1125_v48  ;;  %v1120_v52 = vadd.f32 %v1485_v50, %v1071_v49  ;;  %1135 = sbr.rel (%p1369_p13) target bundleno = 346 (0x15a), region = 63 }
 0x14d   : > { %v1126_v53 = vadd.f32 %v1120_v52, %v318_v51 }
 0x14f   : > { %1131 = vst.msk [vmem:[#allocation2 + $0x18] sm:$0xff] %vm1127_vm1, %v1126_v53 }
 0x150   : > { %v1136_v54 = vld [vmem:[#allocation2] sm:$0xff]  ;;  %v1137_v56 = vld [vmem:[#allocation2 + $0x8] sm:$0xff] }
 0x151   : > { %v1370_v55 = vld [vmem:[#allocation3] ss:$0 sm:$0xff] }
 0x152   : > { %v1147_v57 = vadd.f32 %v1370_v55, %v1136_v54  ;;  %v1148_v58 = vadd.f32 %v1370_v55, %v1137_v56  ;;  %v1138_v59 = vld [vmem:[#allocation2 + $0x10] sm:$0xff] }
 0x153   : > { %v1149_v61 = vadd.f32 %v1370_v55, %v1138_v59 }
 0x154   : > { %1151 = vst.msk [vmem:[%s1778_s30] sm:$0xff] %vm1127_vm1, %v1147_v57  ;;  %1152 = vst.msk [vmem:[%s1778_s30 + $0x8] sm:$0xff] %vm1127_vm1, %v1148_v58 }
 0x155   : > { %1153 = vst.msk [vmem:[%s1778_s30 + $0x10] sm:$0xff] %vm1127_vm1, %v1149_v61 }
 0x156   : > { %v1139_v60 = vld [vmem:[#allocation2 + $0x18] sm:$0xff] }
 0x157   : > { %v1150_v62 = vadd.f32 %v1370_v55, %v1139_v60 }
 0x159   : > { %1154 = vst.msk [vmem:[%s1778_s30 + $0x18] sm:$0xff] %vm1127_vm1, %v1150_v62 }
 0x15a PF: > { %s15_s20 = sadd.s32 1, %s1661_s20   ;;  %s1901_s14 = smov %s1641_s15 }
 0x15b   : > { %p12_p0 = scmp.ge.s32.totalorder %s15_s20, 10   ;;  %s1902_s15 = smov %s1738_s26 }
 0x15c   : > { %s1903_s16 = smov %s1653_s18  ;;  %s1904_s17 = smov %s1657_s19 }
 0x15d   : > { %s1905_s18 = smov %s1908_s2  ;;  %s1906_s19 = smov %s1912_s21 }
 0x15e   :  { %14 = sbr.rel (!%p12_p0) target bundleno = 7 (0x7), region = 104 }

</bundles_post_ra>
